<compile_context>
chip_gen: v7x
topology: tpu7x:2x2x1
jax: 0.10.0
libtpu: 0.0.40
codegen_flags: <defaults>
</compile_context>

<pallas_src>
import functools

import jax
import jax.numpy as jnp
from jax import lax
from jax.experimental import pallas as pl
from jax.experimental.pallas import tpu as pltpu


# ----------------------------------------------------------------------------
# Kernel 1: fused (batched) matmul + bias + activation.
#   A: (G, M, K), W: (G, K, N), b: (G, 1, N) -> O: (G, M, N)
#   grid = (G, N // tn); each step does a full-K matmul on one (M, tn) tile.
# ----------------------------------------------------------------------------
def _mm_bias_act_kernel(a_ref, w_ref, b_ref, o_ref, *, act):
    a = a_ref[0]                                   # (M, K)
    w = w_ref[0]                                   # (K, tn)
    acc = jnp.dot(a, w, preferred_element_type=jnp.float32)
    acc = acc + b_ref[0]                           # (1, tn) broadcasts over M
    if act == "relu":
        acc = jnp.maximum(acc, 0.0)
    elif act == "leaky_relu":
        acc = jnp.where(acc > 0, acc, 0.01 * acc)  # PyTorch default slope
    o_ref[0] = acc.astype(o_ref.dtype)


def matmul_bias_act(a, w, b, *, act="none", tn=None):
    G, M, K = a.shape
    _, _, N = w.shape
    if tn is None:
        tn = N
    assert N % tn == 0
    grid = (G, N // tn)
    return pl.pallas_call(
        functools.partial(_mm_bias_act_kernel, act=act),
        out_shape=jax.ShapeDtypeStruct((G, M, N), a.dtype),
        grid=grid,
        in_specs=[
            pl.BlockSpec((1, M, K), lambda g, n: (g, 0, 0)),
            pl.BlockSpec((1, K, tn), lambda g, n: (g, 0, n)),
            pl.BlockSpec((1, 1, tn), lambda g, n: (g, 0, n)),
        ],
        out_specs=pl.BlockSpec((1, M, tn), lambda g, n: (g, 0, n)),
        compiler_params=pltpu.CompilerParams(
            dimension_semantics=("parallel", "parallel")),
    )(a, w, b)


# ----------------------------------------------------------------------------
# Kernel 2: fused 3x3 max-pool + ReLU (+ optional per-channel global-max norm).
#   x_windows: (C, R, 9, F)  -> out: (C, R, F)
#   grid = (C,); one block holds the whole per-channel tensor, so the
#   normalization max is the global max over (batch, space, features) exactly
#   like `per_channel_out.max()` in the PyTorch module.
# ----------------------------------------------------------------------------
def _pool3x3_relu_kernel(x_ref, o_ref, *, normalize, kw):
    x = x_ref[0]                        # (R, 9, F)
    # Unrolled window max: 8 pure VPU maxes over (R, F) slabs (no XLU reduce).
    m = x[:, 0, :]
    for k in range(1, kw):
        m = jnp.maximum(m, x[:, k, :])
    m = jnp.maximum(m, 0.0)             # ReLU
    if normalize:
        m = m / jnp.max(m)              # per-channel global max (whole block)
    o_ref[0] = m.astype(o_ref.dtype)


def pool3x3_relu(x_windows, *, normalize=False):
    C, R, KW, F = x_windows.shape       # KW == 9
    return pl.pallas_call(
        functools.partial(_pool3x3_relu_kernel, normalize=normalize, kw=KW),
        out_shape=jax.ShapeDtypeStruct((C, R, F), x_windows.dtype),
        grid=(C,),
        in_specs=[pl.BlockSpec((1, R, KW, F), lambda c: (c, 0, 0, 0))],
        out_specs=pl.BlockSpec((1, R, F), lambda c: (c, 0, 0)),
        compiler_params=pltpu.CompilerParams(
            dimension_semantics=("parallel",)),
    )(x_windows)


# ----------------------------------------------------------------------------
# Wrapper-side layout plumbing (pure reshapes / slices / transposes).
# ----------------------------------------------------------------------------
def _im2col_3x3(x_chl):
    """(C, B, H, W, Cin) channels-last -> (C, B*(H-2)*(W-2), 9*Cin).
    K order = (kh, kw, cin) which matches the weight permutation below."""
    C, B, H, W, Cin = x_chl.shape
    Ho, Wo = H - 2, W - 2
    cols = []
    for di in range(3):
        for dj in range(3):
            cols.append(x_chl[:, :, di:di + Ho, dj:dj + Wo, :])
    p = jnp.concatenate(cols, axis=-1)              # (C, B, Ho, Wo, 9*Cin)
    return p.reshape(C, B * Ho * Wo, 9 * Cin)


def _conv_weight_mat(w):
    """(C, O, I, 3, 3) -> (C, 9*I, O) with K order (kh, kw, cin)."""
    C, O, I, KH, KW = w.shape
    return w.transpose(0, 3, 4, 2, 1).reshape(C, KH * KW * I, O)


def _pool_windows(h_chl):
    """(C, B, H, W, F) -> (C, B*Hp*Wp, 9, F) non-overlapping 3x3 windows
    (floor behaviour, like MaxPool2d(3))."""
    C, B, H, W, F = h_chl.shape
    Hp, Wp = H // 3, W // 3
    h = h_chl[:, :, :Hp * 3, :Wp * 3, :]
    h = h.reshape(C, B, Hp, 3, Wp, 3, F)
    h = h.transpose(0, 1, 2, 4, 3, 5, 6)            # (C, B, Hp, Wp, 3, 3, F)
    return h.reshape(C, B * Hp * Wp, 9, F), Hp, Wp


# ----------------------------------------------------------------------------
# Full forward pass (Pallas path).
# ----------------------------------------------------------------------------
def autocalibration7_forward(x, params):
    B, C, H, W = x.shape

    # ---- per-wavelength column: conv1 (1->64, 3x3, valid) ----
    x_chl = x.transpose(1, 0, 2, 3)[..., None]      # (C, B, H, W, 1)
    a1 = _im2col_3x3(x_chl)                         # (C, B*Ho*Wo, 9)
    w1m = _conv_weight_mat(params["w1"])            # (C, 9, 64)
    b1m = params["b1"][:, None, :]                  # (C, 1, 64)
    h1 = matmul_bias_act(a1, w1m, b1m, act="none")  # (C, B*Ho*Wo, 64)
    Ho, Wo = H - 2, W - 2
    h1 = h1.reshape(C, B, Ho, Wo, 64)

    # ---- maxpool(3) + ReLU ----
    win1, Hp1, Wp1 = _pool_windows(h1)
    p1 = pool3x3_relu(win1, normalize=False)        # (C, B*Hp1*Wp1, 64)
    p1 = p1.reshape(C, B, Hp1, Wp1, 64)

    # ---- conv2 (64->128, 3x3, valid) ----
    a2 = _im2col_3x3(p1)                            # (C, B*Ho2*Wo2, 576)
    w2m = _conv_weight_mat(params["w2"])            # (C, 576, 128)
    b2m = params["b2"][:, None, :]                  # (C, 1, 128)
    h2 = matmul_bias_act(a2, w2m, b2m, act="none")  # (C, B*Ho2*Wo2, 128)
    Ho2, Wo2 = Hp1 - 2, Wp1 - 2
    h2 = h2.reshape(C, B, Ho2, Wo2, 128)

    # ---- maxpool(3) + ReLU + per-channel global-max normalization (fused) ----
    win2, Hp2, Wp2 = _pool_windows(h2)
    p2 = pool3x3_relu(win2, normalize=True)         # (C, B*Hp2*Wp2, 128)

    # ---- flatten each column in PyTorch NCHW order, concat over channels ----
    p2 = p2.reshape(C, B, Hp2, Wp2, 128).transpose(0, 1, 4, 2, 3)  # (C,B,128,Hp2,Wp2)
    feats = p2.reshape(C, B, -1).transpose(1, 0, 2).reshape(B, -1)  # (B, C*128*Hp2*Wp2)

    # ---- fc1 + LeakyReLU (tiled over N=768 in tn=256 blocks) ----
    z = matmul_bias_act(feats[None], params["fc1_w"].T[None],
                        params["fc1_b"][None, None],
                        act="leaky_relu", tn=256)[0]                # (B, 768)
    # ---- fc2 + LeakyReLU ----
    z = matmul_bias_act(z[None], params["fc2_w"].T[None],
                        params["fc2_b"][None, None],
                        act="leaky_relu")[0]                        # (B, out)
    return z


# ----------------------------------------------------------------------------
# Pure-JAX reference mirroring the PyTorch module exactly.
# ----------------------------------------------------------------------------
def autocalibration7_ref(x, params):
    B, C, H, W = x.shape
    col_outs = []
    for c in range(C):
        xc = x[:, c:c + 1]                                              # (B,1,H,W)
        h = lax.conv_general_dilated(xc, params["w1"][c], (1, 1), "VALID",
                                     dimension_numbers=("NCHW", "OIHW", "NCHW"))
        h = h + params["b1"][c][None, :, None, None]
        h = lax.reduce_window(h, -jnp.inf, lax.max, (1, 1, 3, 3), (1, 1, 3, 3),
                              "VALID")
        h = jnp.maximum(h, 0.0)
        h = lax.conv_general_dilated(h, params["w2"][c], (1, 1), "VALID",
                                     dimension_numbers=("NCHW", "OIHW", "NCHW"))
        h = h + params["b2"][c][None, :, None, None]
        h = lax.reduce_window(h, -jnp.inf, lax.max, (1, 1, 3, 3), (1, 1, 3, 3),
                              "VALID")
        h = jnp.maximum(h, 0.0)
        h = h / jnp.max(h)
        col_outs.append(h.reshape(B, -1))
    z = jnp.concatenate(col_outs, axis=1)
    z = z @ params["fc1_w"].T + params["fc1_b"]
    z = jnp.where(z > 0, z, 0.01 * z)
    z = z @ params["fc2_w"].T + params["fc2_b"]
    z = jnp.where(z > 0, z, 0.01 * z)
    return z


if __name__ == "__main__":
    key = jax.random.PRNGKey(0)
    # Two 3x3 convs + two pool(3) stages need spatial >= 17; use 32.
    B, C, H, W = 2, 4, 32, 32
    OUT = 4

    # Derived column output size (matches the PyTorch fake_x probe).
    p1s = (H - 2) // 3          # 10
    p2s = (p1s - 2) // 3        # 2
    cnn_dim = 128 * p2s * p2s   # 512
    fc1_in = C * cnn_dim        # 2048
    fc1_out = 256 * 3           # 768

    ks = jax.random.split(key, 9)
    x = jax.random.normal(ks[0], (B, C, H, W), dtype=jnp.float32)

    def uinit(k, shape, fan_in):
        lim = float(fan_in) ** -0.5
        return jax.random.uniform(k, shape, jnp.float32, -lim, lim)

    params = {
        "w1": uinit(ks[1], (C, 64, 1, 3, 3), 1 * 9),
        "b1": uinit(ks[2], (C, 64), 1 * 9),
        "w2": uinit(ks[3], (C, 128, 64, 3, 3), 64 * 9),
        "b2": uinit(ks[4], (C, 128), 64 * 9),
        "fc1_w": uinit(ks[5], (fc1_out, fc1_in), fc1_in),
        "fc1_b": uinit(ks[6], (fc1_out,), fc1_in),
        "fc2_w": uinit(ks[7], (OUT, fc1_out), fc1_out),
        "fc2_b": uinit(ks[8], (OUT,), fc1_out),
    }

    out = autocalibration7_forward(x, params)
    out = jax.block_until_ready(out)

    ref = autocalibration7_ref(x, params)
    assert out.shape == (B, OUT)
    assert jnp.allclose(out, ref, atol=1e-3, rtol=1e-3), \
        float(jnp.max(jnp.abs(out - ref)))

    print("KERNEL_OK")
</pallas_src>

<mosaic_0001>
module attributes {stable_mosaic.version = 11 : i64} {
  func.func @_mm_bias_act_kernel(%arg0: i32, %arg1: i32, %arg2: memref<1x1800x9xf32, #tpu.memory_space<vmem>>, %arg3: memref<1x9x64xf32, #tpu.memory_space<vmem>>, %arg4: memref<1x1x64xf32, #tpu.memory_space<vmem>>, %arg5: memref<1x1800x64xf32, #tpu.memory_space<vmem>>) attributes {dimension_semantics = [#tpu.dimension_semantics<parallel>, #tpu.dimension_semantics<parallel>], iteration_bounds = array<i64: 4, 1>, scalar_prefetch = 0 : i64, scratch_operands = 0 : i64, tpu.core_type = #tpu.core_type<tc>, window_params = [{transform_indices = @transform_0, window_bounds = array<i64: 1, 1800, 9>}, {transform_indices = @transform_1, window_bounds = array<i64: 1, 9, 64>}, {transform_indices = @transform_2, window_bounds = array<i64: 1, 1, 64>}, {transform_indices = @transform_3, window_bounds = array<i64: 1, 1800, 64>}]} {
    %c0 = arith.constant 0 : index
    %c0_0 = arith.constant 0 : index
    %c0_1 = arith.constant 0 : index
    %0 = vector.load %arg2[%c0, %c0_0, %c0_1] : memref<1x1800x9xf32, #tpu.memory_space<vmem>>, vector<1x1800x9xf32>
    %1 = vector.shape_cast %0 : vector<1x1800x9xf32> to vector<1800x9xf32>
    %c0_2 = arith.constant 0 : index
    %c0_3 = arith.constant 0 : index
    %c0_4 = arith.constant 0 : index
    %2 = vector.load %arg3[%c0_2, %c0_3, %c0_4] : memref<1x9x64xf32, #tpu.memory_space<vmem>>, vector<1x9x64xf32>
    %3 = vector.shape_cast %2 : vector<1x9x64xf32> to vector<9x64xf32>
    %cst = arith.constant dense<0.000000e+00> : vector<1800x64xf32>
    %4 = tpu.matmul %1, %3, %cst {dimension_numbers = #tpu.dot_dimension_numbers<[1], [0], [0], [1], [0, 0, 1, 1], [], []>} : vector<1800x9xf32>, vector<9x64xf32>, vector<1800x64xf32> -> vector<1800x64xf32>
    %c0_5 = arith.constant 0 : index
    %c0_6 = arith.constant 0 : index
    %c0_7 = arith.constant 0 : index
    %5 = vector.load %arg4[%c0_5, %c0_6, %c0_7] : memref<1x1x64xf32, #tpu.memory_space<vmem>>, vector<1x1x64xf32>
    %6 = vector.shape_cast %5 : vector<1x1x64xf32> to vector<1x64xf32>
    %7 = vector.broadcast %6 : vector<1x64xf32> to vector<1800x64xf32>
    %8 = arith.addf %4, %7 : vector<1800x64xf32>
    %c0_8 = arith.constant 0 : index
    %c0_9 = arith.constant 0 : index
    %c0_10 = arith.constant 0 : index
    %9 = vector.load %arg5[%c0_8, %c0_9, %c0_10] : memref<1x1800x64xf32, #tpu.memory_space<vmem>>, vector<1x1800x64xf32>
    %10 = vector.shape_cast %9 : vector<1x1800x64xf32> to vector<1800x64xf32>
    %11 = vector.shape_cast %8 : vector<1800x64xf32> to vector<1x1800x64xf32>
    tpu.vector_store %arg5[%c0_8, %c0_9, %c0_10], %11 {strides = array<i32>} : memref<1x1800x64xf32, #tpu.memory_space<vmem>>, vector<1x1800x64xf32>,
    return
  }
  func.func @transform_0(%arg0: i32, %arg1: i32) -> (i32, i32, i32) {
    %c0_i32 = arith.constant 0 : i32
    %c0_i32_0 = arith.constant 0 : i32
    %c0_i32_1 = arith.constant 0 : i32
    return %arg0, %c0_i32, %c0_i32_0 : i32, i32, i32
  }
  func.func @transform_1(%arg0: i32, %arg1: i32) -> (i32, i32, i32) {
    %c0_i32 = arith.constant 0 : i32
    %c0_i32_0 = arith.constant 0 : i32
    return %arg0, %c0_i32, %arg1 : i32, i32, i32
  }
  func.func @transform_2(%arg0: i32, %arg1: i32) -> (i32, i32, i32) {
    %c0_i32 = arith.constant 0 : i32
    %c0_i32_0 = arith.constant 0 : i32
    return %arg0, %c0_i32, %arg1 : i32, i32, i32
  }
  func.func @transform_3(%arg0: i32, %arg1: i32) -> (i32, i32, i32) {
    %c0_i32 = arith.constant 0 : i32
    %c0_i32_0 = arith.constant 0 : i32
    return %arg0, %c0_i32, %arg1 : i32, i32, i32
  }
}

</mosaic_0001>

<bundles_post_ra>
// kernel: tpu_custom_call.1
= control target key start
LH: loop header
LB: loop body
LE: loop exit
PB: predicated region body
PF: predicated region fallthrough
CT: control target
= control target key end

     0   :  { %s3914_s12 = smov 0   ;;  %s3916_s13 = smov 0   ;;  %s5552_s0 = inlined_call_operand.vmem [shape: f32[4,1800,9], index: 0, kind: input, shape index: {}]   ;;  %s5553_s1 = inlined_call_operand.vmem [shape: f32[4,9,64], index: 1, kind: input, shape index: {}]   ;;  %s5554_s2 = inlined_call_operand.vmem [shape: f32[4,1,64], index: 2, kind: input, shape index: {}]   ;;  %s5555_s3 = inlined_call_operand.vmem [shape: f32[4,1800,64], index: 3, kind: output, shape index: {}]  }
   0x1   :  { %s3918_s14 = smov 0  }
   0x2 LB: > { %s25_s15 = sadd.s32 1, %s3884_s13  ;;  %p2688_p0 = scmp.ge.s32.totalorder %s3888_s14, 1  ;;  %s3888_s14 = sphi %s3918_s14, %s13_s14   ;;  %s3884_s13 = sphi %s3916_s13, %s5557_s13   ;;  %s3880_s12 = sphi %s3914_s12, %s5556_s12  }
   0x3   : > { %p27_p1 = scmp.ge.s32.totalorder %s25_s15, 4  ;;  %p179_p2 = scmp.lt.s32.totalorder %s3888_s14, 5 }
   0x5   : > { %s5559_s15 = smov (%p27_p1, %s25_s15), 0  ;;  %p180_p3 = pnand %p2688_p0, %p179_p2 }
   0x6   : > { %p220_p4 = scmp.lt.s32.totalorder (!%p180_p3), %s3880_s12, 3  ;;  %v3890_v0 = vmov (!%p180_p3), 0.0|0.0   ;;  %vm3891_vm0 = vmmov (!%p180_p3), 0   ;;  %v3892_v1 = vmov (!%p180_p3), 0.0   ;;  %vm1157_vm1 = vcmask (!%p180_p3), 1040384  }
   0x7   : > { %183 = sbr.rel (%p180_p3) target bundleno = 686 (0x2ae), region = 32  ;;  %3829 = vmatprep.subr.bf16.mxu0 (!%p180_p3), %v3890_v0  ;;  %3833 = vmatprep.subr.bf16.mxu1 (!%p180_p3), %v3890_v0  ;;  %vm3893_vm2 = vmmov (!%p180_p3), 1   ;;  %vm481_vm4 = vcmask (!%p180_p3), 72704   ;;  %vm2351_vm5 = vcmask (!%p180_p3), 523264  }
   0x8   : > { %3154 = vmatprep.mubr.msk.f32.mxu0 (!%p180_p3), %vm3891_vm0, %v3892_v1  ;;  %3493 = vmatprep.mubr.msk.f32.mxu1 (!%p180_p3), %vm3891_vm0, %v3892_v1  ;;  %vm3831_vm3 = vmpackc.low (!%p180_p3), %vm1157_vm1, %vm3893_vm2 }
   0xe   : > { %s5561_s12 = smov (!%p220_p4, %s3880_s12), 3 }
   0xf   : > { %s2922_s16 = sshll.u32 %s5561_s12, 4  ;;  %s3835_s17 = smul.u32 1800, %s5561_s12 }
  0x10   : > { %s232_s20 = scalar_lea.vmem %s5553_s1, %s2922_s16  ;;  %s4372_s26 = scalar_lea.vmem %s5554_s2, %s5561_s12 }
  0x11   : > { %v472_v2 = vld [vmem:[%s232_s20] sm:$0xff]  ;;  %v473_v3 = vld [vmem:[%s232_s20 + $0x8] sm:$0x1]  ;;  %s3948_s23 = scalar_lea.vmem %s5552_s0, %s3835_s17  ;;  %s4390_s29 = scalar_lea.vmem %s5555_s3, %s3835_s17 }
  0x12   : > { %v3830_v4 = vpack.c.bf16 %v473_v3, %v472_v2  ;;  %v247_v5 = vld [vmem:[%s3948_s23] sm:$0xff]  ;;  %v360_v6 = vld [vmem:[%s3948_s23 + $0x388] sm:$0xff]  ;;  %v361_v8 = vld [vmem:[%s3948_s23 + $0x390] sm:$0xff] }
  0x13   : > { %v248_v7 = vld [vmem:[%s3948_s23 + $0x8] sm:$0xff]  ;;  %v249_v9 = vld [vmem:[%s3948_s23 + $0x10] sm:$0xff]  ;;  %v362_v10 = vld [vmem:[%s3948_s23 + $0x398] sm:$0xff] }
  0x14   : > { %3832 = vmatpush3.bf16.msk.msra.mxu0 %vm3831_vm3, %v3830_v4  ;;  %3834 = vmatpush3.bf16.msk.msra.mxu1 %vm3831_vm3, %v3830_v4  ;;  %v250_v11 = vld [vmem:[%s3948_s23 + $0x18] sm:$0xff]  ;;  %v363_v12 = vld [vmem:[%s3948_s23 + $0x3a0] sm:$0xff]  ;;  %v364_v14 = vld [vmem:[%s3948_s23 + $0x3a8] sm:$0xff] }
  0x15   : > { %v251_v13 = vld [vmem:[%s3948_s23 + $0x20] sm:$0xff]  ;;  %v252_v15 = vld [vmem:[%s3948_s23 + $0x28] sm:$0xff]  ;;  %v365_v16 = vld [vmem:[%s3948_s23 + $0x3b0] sm:$0xff] }
  0x16   : > { %v253_v17 = vld [vmem:[%s3948_s23 + $0x30] sm:$0xff]  ;;  %v366_v18 = vld [vmem:[%s3948_s23 + $0x3b8] sm:$0xff]  ;;  %v367_v20 = vld [vmem:[%s3948_s23 + $0x3c0] sm:$0xff] }
  0x17   : > { %3155 = vmatmul.mubr.msk.f32.vlgmr.msra.gmra.mrb[0].mxu0 %vm481_vm4, %v247_v5  ;;  %3494 = vmatmul.mubr.msk.f32.vlgmr.msra.gmra.mrb[0].mxu1 %vm481_vm4, %v360_v6  ;;  %v254_v19 = vld [vmem:[%s3948_s23 + $0x38] sm:$0xff]  ;;  %v255_v21 = vld [vmem:[%s3948_s23 + $0x40] sm:$0xff]  ;;  %v368_v22 = vld [vmem:[%s3948_s23 + $0x3c8] sm:$0xff] }
  0x18   : > { %3157 = vmatprep.mubr.msk.f32.mxu0 %vm3891_vm0, %v3892_v1  ;;  %3496 = vmatprep.mubr.msk.f32.mxu1 %vm3891_vm0, %v3892_v1  ;;  %v256_v23 = vld [vmem:[%s3948_s23 + $0x48] sm:$0xff]  ;;  %v369_v24 = vld [vmem:[%s3948_s23 + $0x3d0] sm:$0xff]  ;;  %v370_v26 = vld [vmem:[%s3948_s23 + $0x3d8] sm:$0xff] }
  0x19   : > { %v257_v25 = vld [vmem:[%s3948_s23 + $0x50] sm:$0xff]  ;;  %v258_v27 = vld [vmem:[%s3948_s23 + $0x58] sm:$0xff]  ;;  %v371_v28 = vld [vmem:[%s3948_s23 + $0x3e0] sm:$0xff] }
  0x1a   : > { %v259_v29 = vld [vmem:[%s3948_s23 + $0x60] sm:$0xff]  ;;  %v372_v30 = vld [vmem:[%s3948_s23 + $0x3e8] sm:$0xff]  ;;  %v373_v32 = vld [vmem:[%s3948_s23 + $0x3f0] sm:$0xff] }
  0x1b   : > { %3158 = vmatmul.mubr.msk.f32.gmra.mrb[2].mxu0 %vm481_vm4, %v248_v7  ;;  %3497 = vmatmul.mubr.msk.f32.gmra.mrb[2].mxu1 %vm481_vm4, %v361_v8  ;;  %v260_v31 = vld [vmem:[%s3948_s23 + $0x68] sm:$0xff]  ;;  %v261_v33 = vld [vmem:[%s3948_s23 + $0x70] sm:$0xff]  ;;  %v374_v34 = vld [vmem:[%s3948_s23 + $0x3f8] sm:$0xff] }
  0x1c   : > { %3160 = vmatprep.mubr.msk.f32.mxu0 %vm3891_vm0, %v3892_v1  ;;  %3499 = vmatprep.mubr.msk.f32.mxu1 %vm3891_vm0, %v3892_v1  ;;  %v262_v35 = vld [vmem:[%s3948_s23 + $0x78] sm:$0xff]  ;;  %v375_v36 = vld [vmem:[%s3948_s23 + $0x400] sm:$0xff]  ;;  %v376_v38 = vld [vmem:[%s3948_s23 + $0x408] sm:$0xff] }
  0x1d   : > { %v263_v37 = vld [vmem:[%s3948_s23 + $0x80] sm:$0xff]  ;;  %v264_v39 = vld [vmem:[%s3948_s23 + $0x88] sm:$0xff]  ;;  %v377_v40 = vld [vmem:[%s3948_s23 + $0x410] sm:$0xff] }
  0x1e   : > { %v265_v41 = vld [vmem:[%s3948_s23 + $0x90] sm:$0xff]  ;;  %v378_v42 = vld [vmem:[%s3948_s23 + $0x418] sm:$0xff]  ;;  %v379_v44 = vld [vmem:[%s3948_s23 + $0x420] sm:$0xff] }
  0x1f   : > { %3161 = vmatmul.mubr.msk.f32.gmra.mrb[4].mxu0 %vm481_vm4, %v249_v9  ;;  %3500 = vmatmul.mubr.msk.f32.gmra.mrb[4].mxu1 %vm481_vm4, %v362_v10  ;;  %v266_v43 = vld [vmem:[%s3948_s23 + $0x98] sm:$0xff]  ;;  %v267_v45 = vld [vmem:[%s3948_s23 + $0xa0] sm:$0xff]  ;;  %v380_v46 = vld [vmem:[%s3948_s23 + $0x428] sm:$0xff] }
  0x20   : > { %3163 = vmatprep.mubr.msk.f32.mxu0 %vm3891_vm0, %v3892_v1  ;;  %3502 = vmatprep.mubr.msk.f32.mxu1 %vm3891_vm0, %v3892_v1  ;;  %v268_v47 = vld [vmem:[%s3948_s23 + $0xa8] sm:$0xff]  ;;  %v381_v48 = vld [vmem:[%s3948_s23 + $0x430] sm:$0xff]  ;;  %v382_v50 = vld [vmem:[%s3948_s23 + $0x438] sm:$0xff] }
  0x21   : > { %v269_v49 = vld [vmem:[%s3948_s23 + $0xb0] sm:$0xff]  ;;  %v270_v51 = vld [vmem:[%s3948_s23 + $0xb8] sm:$0xff]  ;;  %v383_v52 = vld [vmem:[%s3948_s23 + $0x440] sm:$0xff] }
  0x22   : > { %v271_v53 = vld [vmem:[%s3948_s23 + $0xc0] sm:$0xff]  ;;  %v384_v54 = vld [vmem:[%s3948_s23 + $0x448] sm:$0xff]  ;;  %v385_v56 = vld [vmem:[%s3948_s23 + $0x450] sm:$0xff] }
  0x23   : > { %3164 = vmatmul.mubr.msk.f32.gmra.mrb[6].mxu0 %vm481_vm4, %v250_v11  ;;  %3503 = vmatmul.mubr.msk.f32.gmra.mrb[6].mxu1 %vm481_vm4, %v363_v12  ;;  %v272_v55 = vld [vmem:[%s3948_s23 + $0xc8] sm:$0xff]  ;;  %v273_v57 = vld [vmem:[%s3948_s23 + $0xd0] sm:$0xff]  ;;  %v386_v58 = vld [vmem:[%s3948_s23 + $0x458] sm:$0xff] }
  0x24   : > { %3166 = vmatprep.mubr.msk.f32.mxu0 %vm3891_vm0, %v3892_v1  ;;  %3505 = vmatprep.mubr.msk.f32.mxu1 %vm3891_vm0, %v3892_v1  ;;  %v274_v59 = vld [vmem:[%s3948_s23 + $0xd8] sm:$0xff]  ;;  %v387_v60 = vld [vmem:[%s3948_s23 + $0x460] sm:$0xff]  ;;  %v388_v62 = vld [vmem:[%s3948_s23 + $0x468] sm:$0xff] }
  0x25   : > { %v275_v61 = vld [vmem:[%s3948_s23 + $0xe0] sm:$0xff]  ;;  %v276_v63 = vld [vmem:[%s3948_s23 + $0xe8] sm:$0xff]  ;;  %v389_v0 = vld [vmem:[%s3948_s23 + $0x470] sm:$0xff] }
  0x26   : > { %v277_v2 = vld [vmem:[%s3948_s23 + $0xf0] sm:$0xff]  ;;  %v390_v3 = vld [vmem:[%s3948_s23 + $0x478] sm:$0xff]  ;;  %v391_v5 = vld [vmem:[%s3948_s23 + $0x480] sm:$0xff] }
  0x27   : > { %3167 = vmatmul.mubr.msk.f32.gmra.mrb[8].mxu0 %vm481_vm4, %v251_v13  ;;  %3506 = vmatmul.mubr.msk.f32.gmra.mrb[8].mxu1 %vm481_vm4, %v364_v14  ;;  %v278_v4 = vld [vmem:[%s3948_s23 + $0xf8] sm:$0xff]  ;;  %v279_v6 = vld [vmem:[%s3948_s23 + $0x100] sm:$0xff]  ;;  %v392_v7 = vld [vmem:[%s3948_s23 + $0x488] sm:$0xff] }
  0x28   : > { %3169 = vmatprep.mubr.msk.f32.mxu0 %vm3891_vm0, %v3892_v1  ;;  %3508 = vmatprep.mubr.msk.f32.mxu1 %vm3891_vm0, %v3892_v1  ;;  %v280_v8 = vld [vmem:[%s3948_s23 + $0x108] sm:$0xff]  ;;  %v393_v9 = vld [vmem:[%s3948_s23 + $0x490] sm:$0xff]  ;;  %v394_v11 = vld [vmem:[%s3948_s23 + $0x498] sm:$0xff] }
  0x29   : > { %v281_v10 = vld [vmem:[%s3948_s23 + $0x110] sm:$0xff]  ;;  %v282_v12 = vld [vmem:[%s3948_s23 + $0x118] sm:$0xff]  ;;  %v395_v13 = vld [vmem:[%s3948_s23 + $0x4a0] sm:$0xff] }
  0x2a   : > { %v283_v14 = vld [vmem:[%s3948_s23 + $0x120] sm:$0xff] }
  0x2b   : > { %3170 = vmatmul.mubr.msk.f32.gmra.mrb[10].mxu0 %vm481_vm4, %v252_v15  ;;  %3509 = vmatmul.mubr.msk.f32.gmra.mrb[10].mxu1 %vm481_vm4, %v365_v16  ;;  %v396_v15 = vld [vmem:[%s3948_s23 + $0x4a8] sm:$0xff] }
  0x2c   : > { %3172 = vmatprep.mubr.msk.f32.mxu0 %vm3891_vm0, %v3892_v1  ;;  %3511 = vmatprep.mubr.msk.f32.mxu1 %vm3891_vm0, %v3892_v1  ;;  %v284_v16 = vld [vmem:[%s3948_s23 + $0x128] sm:$0xff] }
  0x2f   : > { %3173 = vmatmul.mubr.msk.f32.gmra.mrb[12].mxu0 %vm481_vm4, %v253_v17  ;;  %3512 = vmatmul.mubr.msk.f32.gmra.mrb[12].mxu1 %vm481_vm4, %v366_v18  ;;  %v397_v17 = vld [vmem:[%s3948_s23 + $0x4b0] sm:$0xff] }
  0x30   : > { %3175 = vmatprep.mubr.msk.f32.mxu0 %vm3891_vm0, %v3892_v1  ;;  %3514 = vmatprep.mubr.msk.f32.mxu1 %vm3891_vm0, %v3892_v1  ;;  %v285_v18 = vld [vmem:[%s3948_s23 + $0x130] sm:$0xff] }
  0x33   : > { %3176 = vmatmul.mubr.msk.f32.gmra.mrb[14].mxu0 %vm481_vm4, %v254_v19  ;;  %3515 = vmatmul.mubr.msk.f32.gmra.mrb[14].mxu1 %vm481_vm4, %v367_v20  ;;  %v398_v19 = vld [vmem:[%s3948_s23 + $0x4b8] sm:$0xff] }
  0x34   : > { %3178 = vmatprep.mubr.msk.f32.mxu0 %vm3891_vm0, %v3892_v1  ;;  %3517 = vmatprep.mubr.msk.f32.mxu1 %vm3891_vm0, %v3892_v1  ;;  %v286_v20 = vld [vmem:[%s3948_s23 + $0x138] sm:$0xff] }
  0x37   : > { %3179 = vmatmul.mubr.msk.f32.gmra.mrb[16].mxu0 %vm481_vm4, %v255_v21  ;;  %3518 = vmatmul.mubr.msk.f32.gmra.mrb[16].mxu1 %vm481_vm4, %v368_v22  ;;  %v399_v21 = vld [vmem:[%s3948_s23 + $0x4c0] sm:$0xff] }
  0x38   : > { %3181 = vmatprep.mubr.msk.f32.mxu0 %vm3891_vm0, %v3892_v1  ;;  %3520 = vmatprep.mubr.msk.f32.mxu1 %vm3891_vm0, %v3892_v1  ;;  %v287_v22 = vld [vmem:[%s3948_s23 + $0x140] sm:$0xff] }
  0x3b   : > { %3182 = vmatmul.mubr.msk.f32.gmra.mrb[18].mxu0 %vm481_vm4, %v256_v23  ;;  %3521 = vmatmul.mubr.msk.f32.gmra.mrb[18].mxu1 %vm481_vm4, %v369_v24  ;;  %v400_v23 = vld [vmem:[%s3948_s23 + $0x4c8] sm:$0xff] }
  0x3c   : > { %3184 = vmatprep.mubr.msk.f32.mxu0 %vm3891_vm0, %v3892_v1  ;;  %3523 = vmatprep.mubr.msk.f32.mxu1 %vm3891_vm0, %v3892_v1  ;;  %v288_v24 = vld [vmem:[%s3948_s23 + $0x148] sm:$0xff] }
  0x3f   : > { %3185 = vmatmul.mubr.msk.f32.gmra.mrb[20].mxu0 %vm481_vm4, %v257_v25  ;;  %3524 = vmatmul.mubr.msk.f32.gmra.mrb[20].mxu1 %vm481_vm4, %v370_v26  ;;  %v401_v25 = vld [vmem:[%s3948_s23 + $0x4d0] sm:$0xff] }
  0x40   : > { %3187 = vmatprep.mubr.msk.f32.mxu0 %vm3891_vm0, %v3892_v1  ;;  %3526 = vmatprep.mubr.msk.f32.mxu1 %vm3891_vm0, %v3892_v1  ;;  %v289_v26 = vld [vmem:[%s3948_s23 + $0x150] sm:$0xff] }
  0x43   : > { %3188 = vmatmul.mubr.msk.f32.gmra.mrb[22].mxu0 %vm481_vm4, %v258_v27  ;;  %3527 = vmatmul.mubr.msk.f32.gmra.mrb[22].mxu1 %vm481_vm4, %v371_v28  ;;  %v402_v27 = vld [vmem:[%s3948_s23 + $0x4d8] sm:$0xff] }
  0x44   : > { %3190 = vmatprep.mubr.msk.f32.mxu0 %vm3891_vm0, %v3892_v1  ;;  %3529 = vmatprep.mubr.msk.f32.mxu1 %vm3891_vm0, %v3892_v1  ;;  %v290_v28 = vld [vmem:[%s3948_s23 + $0x158] sm:$0xff] }
  0x47   : > { %3191 = vmatmul.mubr.msk.f32.gmra.mrb[24].mxu0 %vm481_vm4, %v259_v29  ;;  %3530 = vmatmul.mubr.msk.f32.gmra.mrb[24].mxu1 %vm481_vm4, %v372_v30  ;;  %v403_v29 = vld [vmem:[%s3948_s23 + $0x4e0] sm:$0xff] }
  0x48   : > { %3193 = vmatprep.mubr.msk.f32.mxu0 %vm3891_vm0, %v3892_v1  ;;  %3532 = vmatprep.mubr.msk.f32.mxu1 %vm3891_vm0, %v3892_v1  ;;  %v291_v30 = vld [vmem:[%s3948_s23 + $0x160] sm:$0xff] }
  0x4b   : > { %3194 = vmatmul.mubr.msk.f32.gmra.mrb[26].mxu0 %vm481_vm4, %v260_v31  ;;  %3533 = vmatmul.mubr.msk.f32.gmra.mrb[26].mxu1 %vm481_vm4, %v373_v32  ;;  %v404_v31 = vld [vmem:[%s3948_s23 + $0x4e8] sm:$0xff] }
  0x4c   : > { %3196 = vmatprep.mubr.msk.f32.mxu0 %vm3891_vm0, %v3892_v1  ;;  %3535 = vmatprep.mubr.msk.f32.mxu1 %vm3891_vm0, %v3892_v1  ;;  %v292_v32 = vld [vmem:[%s3948_s23 + $0x168] sm:$0xff] }
  0x4f   : > { %3197 = vmatmul.mubr.msk.f32.gmra.mrb[28].mxu0 %vm481_vm4, %v261_v33  ;;  %3536 = vmatmul.mubr.msk.f32.gmra.mrb[28].mxu1 %vm481_vm4, %v374_v34  ;;  %v405_v33 = vld [vmem:[%s3948_s23 + $0x4f0] sm:$0xff] }
  0x50   : > { %3199 = vmatprep.mubr.msk.f32.mxu0 %vm3891_vm0, %v3892_v1  ;;  %3538 = vmatprep.mubr.msk.f32.mxu1 %vm3891_vm0, %v3892_v1  ;;  %v293_v34 = vld [vmem:[%s3948_s23 + $0x170] sm:$0xff] }
  0x53   : > { %3200 = vmatmul.mubr.msk.f32.gmra.mrb[30].mxu0 %vm481_vm4, %v262_v35  ;;  %3539 = vmatmul.mubr.msk.f32.gmra.mrb[30].mxu1 %vm481_vm4, %v375_v36  ;;  %v406_v35 = vld [vmem:[%s3948_s23 + $0x4f8] sm:$0xff] }
  0x54   : > { %3202 = vmatprep.mubr.msk.f32.mxu0 %vm3891_vm0, %v3892_v1  ;;  %3541 = vmatprep.mubr.msk.f32.mxu1 %vm3891_vm0, %v3892_v1  ;;  %v294_v36 = vld [vmem:[%s3948_s23 + $0x178] sm:$0xff] }
  0x57   : > { %3203 = vmatmul.mubr.msk.f32.gmra.mrb[32].mxu0 %vm481_vm4, %v263_v37  ;;  %3542 = vmatmul.mubr.msk.f32.gmra.mrb[32].mxu1 %vm481_vm4, %v376_v38  ;;  %v407_v37 = vld [vmem:[%s3948_s23 + $0x500] sm:$0xff] }
  0x58   : > { %3205 = vmatprep.mubr.msk.f32.mxu0 %vm3891_vm0, %v3892_v1  ;;  %3544 = vmatprep.mubr.msk.f32.mxu1 %vm3891_vm0, %v3892_v1  ;;  %v295_v38 = vld [vmem:[%s3948_s23 + $0x180] sm:$0xff] }
  0x5b   : > { %3206 = vmatmul.mubr.msk.f32.gmra.mrb[34].mxu0 %vm481_vm4, %v264_v39  ;;  %3545 = vmatmul.mubr.msk.f32.gmra.mrb[34].mxu1 %vm481_vm4, %v377_v40  ;;  %v408_v39 = vld [vmem:[%s3948_s23 + $0x508] sm:$0xff] }
  0x5c   : > { %3208 = vmatprep.mubr.msk.f32.mxu0 %vm3891_vm0, %v3892_v1  ;;  %3547 = vmatprep.mubr.msk.f32.mxu1 %vm3891_vm0, %v3892_v1  ;;  %v296_v40 = vld [vmem:[%s3948_s23 + $0x188] sm:$0xff] }
  0x5f   : > { %3209 = vmatmul.mubr.msk.f32.gmra.mrb[36].mxu0 %vm481_vm4, %v265_v41  ;;  %3548 = vmatmul.mubr.msk.f32.gmra.mrb[36].mxu1 %vm481_vm4, %v378_v42  ;;  %v409_v41 = vld [vmem:[%s3948_s23 + $0x510] sm:$0xff] }
  0x60   : > { %3211 = vmatprep.mubr.msk.f32.mxu0 %vm3891_vm0, %v3892_v1  ;;  %3550 = vmatprep.mubr.msk.f32.mxu1 %vm3891_vm0, %v3892_v1  ;;  %v297_v42 = vld [vmem:[%s3948_s23 + $0x190] sm:$0xff] }
  0x63   : > { %3212 = vmatmul.mubr.msk.f32.gmra.mrb[38].mxu0 %vm481_vm4, %v266_v43  ;;  %3551 = vmatmul.mubr.msk.f32.gmra.mrb[38].mxu1 %vm481_vm4, %v379_v44  ;;  %v410_v43 = vld [vmem:[%s3948_s23 + $0x518] sm:$0xff] }
  0x64   : > { %3214 = vmatprep.mubr.msk.f32.mxu0 %vm3891_vm0, %v3892_v1  ;;  %3553 = vmatprep.mubr.msk.f32.mxu1 %vm3891_vm0, %v3892_v1  ;;  %v298_v44 = vld [vmem:[%s3948_s23 + $0x198] sm:$0xff] }
  0x67   : > { %3215 = vmatmul.mubr.msk.f32.gmra.mrb[40].mxu0 %vm481_vm4, %v267_v45  ;;  %3554 = vmatmul.mubr.msk.f32.gmra.mrb[40].mxu1 %vm481_vm4, %v380_v46  ;;  %v411_v45 = vld [vmem:[%s3948_s23 + $0x520] sm:$0xff] }
  0x68   : > { %3217 = vmatprep.mubr.msk.f32.mxu0 %vm3891_vm0, %v3892_v1  ;;  %3556 = vmatprep.mubr.msk.f32.mxu1 %vm3891_vm0, %v3892_v1  ;;  %v299_v46 = vld [vmem:[%s3948_s23 + $0x1a0] sm:$0xff] }
  0x6b   : > { %3218 = vmatmul.mubr.msk.f32.gmra.mrb[42].mxu0 %vm481_vm4, %v268_v47  ;;  %3557 = vmatmul.mubr.msk.f32.gmra.mrb[42].mxu1 %vm481_vm4, %v381_v48  ;;  %v412_v47 = vld [vmem:[%s3948_s23 + $0x528] sm:$0xff]  ;;  %v4377_v48 = vld [vmem:[%s4372_s26] ss:$0 sm:$0xff] }
  0x6c   : > { %3220 = vmatprep.mubr.msk.f32.mxu0 %vm3891_vm0, %v3892_v1  ;;  %3559 = vmatprep.mubr.msk.f32.mxu1 %vm3891_vm0, %v3892_v1 }
  0x6f   : > { %3221 = vmatmul.mubr.msk.f32.gmra.mrb[44].mxu0 %vm481_vm4, %v269_v49  ;;  %3560 = vmatmul.mubr.msk.f32.gmra.mrb[44].mxu1 %vm481_vm4, %v382_v50  ;;  %v300_v49 = vld [vmem:[%s3948_s23 + $0x1a8] sm:$0xff]  ;;  %v413_v50 = vld [vmem:[%s3948_s23 + $0x530] sm:$0xff] }
  0x70   : > { %3223 = vmatprep.mubr.msk.f32.mxu0 %vm3891_vm0, %v3892_v1  ;;  %3562 = vmatprep.mubr.msk.f32.mxu1 %vm3891_vm0, %v3892_v1 }
  0x73   : > { %3224 = vmatmul.mubr.msk.f32.gmra.mrb[46].mxu0 %vm481_vm4, %v270_v51  ;;  %3563 = vmatmul.mubr.msk.f32.gmra.mrb[46].mxu1 %vm481_vm4, %v383_v52 }
  0x74   : > { %3226 = vmatprep.mubr.msk.f32.mxu0 %vm3891_vm0, %v3892_v1  ;;  %3565 = vmatprep.mubr.msk.f32.mxu1 %vm3891_vm0, %v3892_v1 }
  0x77   : > { %3227 = vmatmul.mubr.msk.f32.gmra.mrb[48].mxu0 %vm481_vm4, %v271_v53  ;;  %3566 = vmatmul.mubr.msk.f32.gmra.mrb[48].mxu1 %vm481_vm4, %v384_v54 }
  0x78   : > { %3229 = vmatprep.mubr.msk.f32.mxu0 %vm3891_vm0, %v3892_v1  ;;  %3568 = vmatprep.mubr.msk.f32.mxu1 %vm3891_vm0, %v3892_v1 }
  0x7b   : > { %3230 = vmatmul.mubr.msk.f32.gmra.mrb[50].mxu0 %vm481_vm4, %v272_v55  ;;  %3569 = vmatmul.mubr.msk.f32.gmra.mrb[50].mxu1 %vm481_vm4, %v385_v56 }
  0x7c   : > { %3232 = vmatprep.mubr.msk.f32.mxu0 %vm3891_vm0, %v3892_v1  ;;  %3571 = vmatprep.mubr.msk.f32.mxu1 %vm3891_vm0, %v3892_v1 }
  0x7f   : > { %3233 = vmatmul.mubr.msk.f32.gmra.mrb[52].mxu0 %vm481_vm4, %v273_v57  ;;  %3572 = vmatmul.mubr.msk.f32.gmra.mrb[52].mxu1 %vm481_vm4, %v386_v58  ;;  %v301_v57 = vld [vmem:[%s3948_s23 + $0x1b0] sm:$0xff]  ;;  %v414_v58 = vld [vmem:[%s3948_s23 + $0x538] sm:$0xff] }
  0x80   : > { %3235 = vmatprep.mubr.msk.f32.mxu0 %vm3891_vm0, %v3892_v1  ;;  %3574 = vmatprep.mubr.msk.f32.mxu1 %vm3891_vm0, %v3892_v1 }
  0x83   : > { %3236 = vmatmul.mubr.msk.f32.gmra.mrb[54].mxu0 %vm481_vm4, %v274_v59  ;;  %3575 = vmatmul.mubr.msk.f32.gmra.mrb[54].mxu1 %vm481_vm4, %v387_v60 }
  0x84   : > { %3238 = vmatprep.mubr.msk.f32.mxu0 %vm3891_vm0, %v3892_v1  ;;  %3577 = vmatprep.mubr.msk.f32.mxu1 %vm3891_vm0, %v3892_v1 }
  0x87   : > { %3239 = vmatmul.mubr.msk.f32.gmra.mrb[56].mxu0 %vm481_vm4, %v275_v61  ;;  %3578 = vmatmul.mubr.msk.f32.gmra.mrb[56].mxu1 %vm481_vm4, %v388_v62 }
  0x88   : > { %3241 = vmatprep.mubr.msk.f32.mxu0 %vm3891_vm0, %v3892_v1  ;;  %3580 = vmatprep.mubr.msk.f32.mxu1 %vm3891_vm0, %v3892_v1 }
  0x8b   : > { %3242 = vmatmul.mubr.msk.f32.gmra.mrb[58].mxu0 %vm481_vm4, %v276_v63  ;;  %3581 = vmatmul.mubr.msk.f32.gmra.mrb[58].mxu1 %vm481_vm4, %v389_v0 }
  0x8c   : > { %3244 = vmatprep.mubr.msk.f32.mxu0 %vm3891_vm0, %v3892_v1  ;;  %3583 = vmatprep.mubr.msk.f32.mxu1 %vm3891_vm0, %v3892_v1 }
  0x8f   : > { %3245 = vmatmul.mubr.msk.f32.gmra.mrb[60].mxu0 %vm481_vm4, %v277_v2  ;;  %3584 = vmatmul.mubr.msk.f32.gmra.mrb[60].mxu1 %vm481_vm4, %v390_v3  ;;  %v302_v2 = vld [vmem:[%s3948_s23 + $0x1b8] sm:$0xff]  ;;  %v415_v3 = vld [vmem:[%s3948_s23 + $0x540] sm:$0xff] }
  0x90   : > { %3247 = vmatprep.mubr.msk.f32.mxu0 %vm3891_vm0, %v3892_v1  ;;  %3586 = vmatprep.mubr.msk.f32.mxu1 %vm3891_vm0, %v3892_v1 }
  0x93   : > { %3248 = vmatmul.mubr.msk.f32.gmra.mrb[62].mxu0 %vm481_vm4, %v278_v4  ;;  %3587 = vmatmul.mubr.msk.f32.gmra.mrb[62].mxu1 %vm481_vm4, %v391_v5 }
  0x94   : > { %3250 = vmatprep.mubr.msk.f32.mxu0 %vm3891_vm0, %v3892_v1  ;;  %3589 = vmatprep.mubr.msk.f32.mxu1 %vm3891_vm0, %v3892_v1 }
  0x97   : > { %3251 = vmatmul.mubr.msk.f32.gmra.mrb[64].mxu0 %vm481_vm4, %v279_v6  ;;  %3590 = vmatmul.mubr.msk.f32.gmra.mrb[64].mxu1 %vm481_vm4, %v392_v7 }
  0x98   : > { %3253 = vmatprep.mubr.msk.f32.mxu0 %vm3891_vm0, %v3892_v1  ;;  %3592 = vmatprep.mubr.msk.f32.mxu1 %vm3891_vm0, %v3892_v1 }
  0x9b   : > { %3254 = vmatmul.mubr.msk.f32.gmra.mrb[66].mxu0 %vm481_vm4, %v280_v8  ;;  %3593 = vmatmul.mubr.msk.f32.gmra.mrb[66].mxu1 %vm481_vm4, %v393_v9 }
  0x9c   : > { %3256 = vmatprep.mubr.msk.f32.mxu0 %vm3891_vm0, %v3892_v1  ;;  %3595 = vmatprep.mubr.msk.f32.mxu1 %vm3891_vm0, %v3892_v1 }
  0x9f   : > { %3257 = vmatmul.mubr.msk.f32.gmra.mrb[68].mxu0 %vm481_vm4, %v281_v10  ;;  %3596 = vmatmul.mubr.msk.f32.gmra.mrb[68].mxu1 %vm481_vm4, %v394_v11  ;;  %v303_v10 = vld [vmem:[%s3948_s23 + $0x1c0] sm:$0xff]  ;;  %v416_v11 = vld [vmem:[%s3948_s23 + $0x548] sm:$0xff] }
  0xa0   : > { %3259 = vmatprep.mubr.msk.f32.mxu0 %vm3891_vm0, %v3892_v1  ;;  %3598 = vmatprep.mubr.msk.f32.mxu1 %vm3891_vm0, %v3892_v1 }
  0xa3   : > { %3260 = vmatmul.mubr.msk.f32.gmra.mrb[70].mxu0 %vm481_vm4, %v282_v12  ;;  %3599 = vmatmul.mubr.msk.f32.gmra.mrb[70].mxu1 %vm481_vm4, %v395_v13 }
  0xa4   : > { %3262 = vmatprep.mubr.msk.f32.mxu0 %vm3891_vm0, %v3892_v1  ;;  %3601 = vmatprep.mubr.msk.f32.mxu1 %vm3891_vm0, %v3892_v1 }
  0xa7   : > { %3263 = vmatmul.mubr.msk.f32.gmra.mrb[72].mxu0 %vm481_vm4, %v283_v14  ;;  %3602 = vmatmul.mubr.msk.f32.gmra.mrb[72].mxu1 %vm481_vm4, %v396_v15 }
  0xa8   : > { %3265 = vmatprep.mubr.msk.f32.mxu0 %vm3891_vm0, %v3892_v1  ;;  %3604 = vmatprep.mubr.msk.f32.mxu1 %vm3891_vm0, %v3892_v1 }
  0xab   : > { %3266 = vmatmul.mubr.msk.f32.gmra.mrb[74].mxu0 %vm481_vm4, %v284_v16  ;;  %3605 = vmatmul.mubr.msk.f32.gmra.mrb[74].mxu1 %vm481_vm4, %v397_v17 }
  0xac   : > { %3268 = vmatprep.mubr.msk.f32.mxu0 %vm3891_vm0, %v3892_v1  ;;  %3607 = vmatprep.mubr.msk.f32.mxu1 %vm3891_vm0, %v3892_v1 }
  0xaf   : > { %3269 = vmatmul.mubr.msk.f32.gmra.mrb[76].mxu0 %vm481_vm4, %v285_v18  ;;  %3608 = vmatmul.mubr.msk.f32.gmra.mrb[76].mxu1 %vm481_vm4, %v398_v19  ;;  %v304_v18 = vld [vmem:[%s3948_s23 + $0x1c8] sm:$0xff]  ;;  %v417_v19 = vld [vmem:[%s3948_s23 + $0x550] sm:$0xff] }
  0xb0   : > { %3271 = vmatprep.mubr.msk.f32.mxu0 %vm3891_vm0, %v3892_v1  ;;  %3610 = vmatprep.mubr.msk.f32.mxu1 %vm3891_vm0, %v3892_v1 }
  0xb3   : > { %3272 = vmatmul.mubr.msk.f32.gmra.mrb[78].mxu0 %vm481_vm4, %v286_v20  ;;  %3611 = vmatmul.mubr.msk.f32.gmra.mrb[78].mxu1 %vm481_vm4, %v399_v21 }
  0xb4   : > { %3274 = vmatprep.mubr.msk.f32.mxu0 %vm3891_vm0, %v3892_v1  ;;  %3613 = vmatprep.mubr.msk.f32.mxu1 %vm3891_vm0, %v3892_v1 }
  0xb7   : > { %3275 = vmatmul.mubr.msk.f32.gmra.mrb[80].mxu0 %vm481_vm4, %v287_v22  ;;  %3614 = vmatmul.mubr.msk.f32.gmra.mrb[80].mxu1 %vm481_vm4, %v400_v23 }
  0xb8   : > { %3277 = vmatprep.mubr.msk.f32.mxu0 %vm3891_vm0, %v3892_v1  ;;  %3616 = vmatprep.mubr.msk.f32.mxu1 %vm3891_vm0, %v3892_v1 }
  0xbb   : > { %3278 = vmatmul.mubr.msk.f32.gmra.mrb[82].mxu0 %vm481_vm4, %v288_v24  ;;  %3617 = vmatmul.mubr.msk.f32.gmra.mrb[82].mxu1 %vm481_vm4, %v401_v25 }
  0xbc   : > { %3280 = vmatprep.mubr.msk.f32.mxu0 %vm3891_vm0, %v3892_v1  ;;  %3619 = vmatprep.mubr.msk.f32.mxu1 %vm3891_vm0, %v3892_v1 }
  0xbf   : > { %3281 = vmatmul.mubr.msk.f32.gmra.mrb[84].mxu0 %vm481_vm4, %v289_v26  ;;  %3620 = vmatmul.mubr.msk.f32.gmra.mrb[84].mxu1 %vm481_vm4, %v402_v27  ;;  %v305_v26 = vld [vmem:[%s3948_s23 + $0x1d0] sm:$0xff]  ;;  %v418_v27 = vld [vmem:[%s3948_s23 + $0x558] sm:$0xff] }
  0xc0   : > { %3283 = vmatprep.mubr.msk.f32.mxu0 %vm3891_vm0, %v3892_v1  ;;  %3622 = vmatprep.mubr.msk.f32.mxu1 %vm3891_vm0, %v3892_v1 }
  0xc3   : > { %3284 = vmatmul.mubr.msk.f32.gmra.mrb[86].mxu0 %vm481_vm4, %v290_v28  ;;  %3623 = vmatmul.mubr.msk.f32.gmra.mrb[86].mxu1 %vm481_vm4, %v403_v29 }
  0xc4   : > { %3286 = vmatprep.mubr.msk.f32.mxu0 %vm3891_vm0, %v3892_v1  ;;  %3625 = vmatprep.mubr.msk.f32.mxu1 %vm3891_vm0, %v3892_v1 }
  0xc7   : > { %3287 = vmatmul.mubr.msk.f32.gmra.mrb[88].mxu0 %vm481_vm4, %v291_v30  ;;  %3626 = vmatmul.mubr.msk.f32.gmra.mrb[88].mxu1 %vm481_vm4, %v404_v31 }
  0xc8   : > { %3289 = vmatprep.mubr.msk.f32.mxu0 %vm3891_vm0, %v3892_v1  ;;  %3628 = vmatprep.mubr.msk.f32.mxu1 %vm3891_vm0, %v3892_v1 }
  0xcb   : > { %3290 = vmatmul.mubr.msk.f32.gmra.mrb[90].mxu0 %vm481_vm4, %v292_v32  ;;  %3629 = vmatmul.mubr.msk.f32.gmra.mrb[90].mxu1 %vm481_vm4, %v405_v33 }
  0xcc   : > { %3292 = vmatprep.mubr.msk.f32.mxu0 %vm3891_vm0, %v3892_v1  ;;  %3631 = vmatprep.mubr.msk.f32.mxu1 %vm3891_vm0, %v3892_v1 }
  0xcf   : > { %3293 = vmatmul.mubr.msk.f32.gmra.mrb[92].mxu0 %vm481_vm4, %v293_v34  ;;  %3632 = vmatmul.mubr.msk.f32.gmra.mrb[92].mxu1 %vm481_vm4, %v406_v35  ;;  %v306_v34 = vld [vmem:[%s3948_s23 + $0x1d8] sm:$0xff]  ;;  %v419_v35 = vld [vmem:[%s3948_s23 + $0x560] sm:$0xff] }
  0xd0   : > { %3295 = vmatprep.mubr.msk.f32.mxu0 %vm3891_vm0, %v3892_v1  ;;  %3634 = vmatprep.mubr.msk.f32.mxu1 %vm3891_vm0, %v3892_v1 }
  0xd3   : > { %3296 = vmatmul.mubr.msk.f32.gmra.mrb[94].mxu0 %vm481_vm4, %v294_v36  ;;  %3635 = vmatmul.mubr.msk.f32.gmra.mrb[94].mxu1 %vm481_vm4, %v407_v37 }
  0xd4   : > { %3298 = vmatprep.mubr.msk.f32.mxu0 %vm3891_vm0, %v3892_v1  ;;  %3637 = vmatprep.mubr.msk.f32.mxu1 %vm3891_vm0, %v3892_v1 }
  0xd7   : > { %3299 = vmatmul.mubr.msk.f32.gmra.mrb[96].mxu0 %vm481_vm4, %v295_v38  ;;  %3638 = vmatmul.mubr.msk.f32.gmra.mrb[96].mxu1 %vm481_vm4, %v408_v39 }
  0xd8   : > { %3301 = vmatprep.mubr.msk.f32.mxu0 %vm3891_vm0, %v3892_v1  ;;  %3640 = vmatprep.mubr.msk.f32.mxu1 %vm3891_vm0, %v3892_v1 }
  0xdb   : > { %3302 = vmatmul.mubr.msk.f32.gmra.mrb[98].mxu0 %vm481_vm4, %v296_v40  ;;  %3641 = vmatmul.mubr.msk.f32.gmra.mrb[98].mxu1 %vm481_vm4, %v409_v41 }
  0xdc   : > { %3304 = vmatprep.mubr.msk.f32.mxu0 %vm3891_vm0, %v3892_v1  ;;  %3643 = vmatprep.mubr.msk.f32.mxu1 %vm3891_vm0, %v3892_v1 }
  0xdf   : > { %3305 = vmatmul.mubr.msk.f32.gmra.mrb[100].mxu0 %vm481_vm4, %v297_v42  ;;  %3644 = vmatmul.mubr.msk.f32.gmra.mrb[100].mxu1 %vm481_vm4, %v410_v43  ;;  %v307_v42 = vld [vmem:[%s3948_s23 + $0x1e0] sm:$0xff]  ;;  %v420_v43 = vld [vmem:[%s3948_s23 + $0x568] sm:$0xff] }
  0xe0   : > { %3307 = vmatprep.mubr.msk.f32.mxu0 %vm3891_vm0, %v3892_v1  ;;  %3646 = vmatprep.mubr.msk.f32.mxu1 %vm3891_vm0, %v3892_v1 }
  0xe3   : > { %3308 = vmatmul.mubr.msk.f32.gmra.mrb[102].mxu0 %vm481_vm4, %v298_v44  ;;  %3647 = vmatmul.mubr.msk.f32.gmra.mrb[102].mxu1 %vm481_vm4, %v411_v45 }
  0xe4   : > { %3310 = vmatprep.mubr.msk.f32.mxu0 %vm3891_vm0, %v3892_v1  ;;  %3649 = vmatprep.mubr.msk.f32.mxu1 %vm3891_vm0, %v3892_v1 }
  0xe7   : > { %3311 = vmatmul.mubr.msk.f32.gmra.mrb[104].mxu0 %vm481_vm4, %v299_v46  ;;  %3650 = vmatmul.mubr.msk.f32.gmra.mrb[104].mxu1 %vm481_vm4, %v412_v47 }
  0xe8   : > { %3313 = vmatprep.mubr.msk.f32.mxu0 %vm3891_vm0, %v3892_v1  ;;  %3652 = vmatprep.mubr.msk.f32.mxu1 %vm3891_vm0, %v3892_v1 }
  0xea   : > { %v1227_v51 = vpop.f32.mrb[0].mxu0  ;;  %v1792_v52 = vpop.f32.mrb[0].mxu1 }
  0xeb   : > { %v1228_v53 = vadd.f32 %v4377_v48, %v1227_v51  ;;  %v3156_v54 = vpop.f32.mrb[1].mxu0  ;;  %3314 = vmatmul.mubr.msk.f32.gmra.mrb[106].mxu0 %vm481_vm4, %v300_v49  ;;  %v1793_v55 = vadd.f32 %v4377_v48, %v1792_v52  ;;  %v3495_v56 = vpop.f32.mrb[1].mxu1  ;;  %3653 = vmatmul.mubr.msk.f32.gmra.mrb[106].mxu1 %vm481_vm4, %v413_v50  ;;  %v308_v51 = vld [vmem:[%s3948_s23 + $0x1e8] sm:$0xff]  ;;  %v421_v52 = vld [vmem:[%s3948_s23 + $0x570] sm:$0xff] }
  0xec   : > { %3316 = vmatprep.mubr.msk.f32.mxu0 %vm3891_vm0, %v3892_v1  ;;  %3655 = vmatprep.mubr.msk.f32.mxu1 %vm3891_vm0, %v3892_v1 }
  0xed   : > { %2352 = vst.msk [vmem:[%s4390_s29] sm:$0xff] %vm2351_vm5, %v1228_v53  ;;  %2465 = vst.msk [vmem:[%s4390_s29 + $0x388] sm:$0xff] %vm2351_vm5, %v1793_v55 }
  0xee   : > { %v1232_v59 = vpop.f32.mrb[2].mxu0  ;;  %v1797_v60 = vpop.f32.mrb[2].mxu1 }
  0xef   : > { %v1233_v61 = vadd.f32 %v4377_v48, %v1232_v59  ;;  %v3159_v62 = vpop.f32.mrb[3].mxu0  ;;  %3317 = vmatmul.mubr.msk.f32.gmra.mrb[108].mxu0 %vm481_vm4, %v301_v57  ;;  %v1798_v63 = vadd.f32 %v4377_v48, %v1797_v60  ;;  %v3498_v0 = vpop.f32.mrb[3].mxu1  ;;  %3656 = vmatmul.mubr.msk.f32.gmra.mrb[108].mxu1 %vm481_vm4, %v414_v58  ;;  %v309_v59 = vld [vmem:[%s3948_s23 + $0x1f0] sm:$0xff]  ;;  %v422_v60 = vld [vmem:[%s3948_s23 + $0x578] sm:$0xff] }
  0xf0   : > { %3319 = vmatprep.mubr.msk.f32.mxu0 %vm3891_vm0, %v3892_v1  ;;  %3658 = vmatprep.mubr.msk.f32.mxu1 %vm3891_vm0, %v3892_v1 }
  0xf1   : > { %2353 = vst.msk [vmem:[%s4390_s29 + $0x8] sm:$0xff] %vm2351_vm5, %v1233_v61  ;;  %2466 = vst.msk [vmem:[%s4390_s29 + $0x390] sm:$0xff] %vm2351_vm5, %v1798_v63 }
  0xf2   : > { %v1237_v4 = vpop.f32.mrb[4].mxu0  ;;  %v1802_v5 = vpop.f32.mrb[4].mxu1 }
  0xf3   : > { %v1238_v6 = vadd.f32 %v4377_v48, %v1237_v4  ;;  %v3162_v7 = vpop.f32.mrb[5].mxu0  ;;  %3320 = vmatmul.mubr.msk.f32.gmra.mrb[110].mxu0 %vm481_vm4, %v302_v2  ;;  %v1803_v8 = vadd.f32 %v4377_v48, %v1802_v5  ;;  %v3501_v9 = vpop.f32.mrb[5].mxu1  ;;  %3659 = vmatmul.mubr.msk.f32.gmra.mrb[110].mxu1 %vm481_vm4, %v415_v3  ;;  %v310_v4 = vld [vmem:[%s3948_s23 + $0x1f8] sm:$0xff]  ;;  %v423_v5 = vld [vmem:[%s3948_s23 + $0x580] sm:$0xff] }
  0xf4   : > { %3322 = vmatprep.mubr.msk.f32.mxu0 %vm3891_vm0, %v3892_v1  ;;  %3661 = vmatprep.mubr.msk.f32.mxu1 %vm3891_vm0, %v3892_v1 }
  0xf5   : > { %2354 = vst.msk [vmem:[%s4390_s29 + $0x10] sm:$0xff] %vm2351_vm5, %v1238_v6  ;;  %2467 = vst.msk [vmem:[%s4390_s29 + $0x398] sm:$0xff] %vm2351_vm5, %v1803_v8 }
  0xf6   : > { %v1242_v12 = vpop.f32.mrb[6].mxu0  ;;  %v1807_v13 = vpop.f32.mrb[6].mxu1 }
  0xf7   : > { %v1243_v14 = vadd.f32 %v4377_v48, %v1242_v12  ;;  %v3165_v15 = vpop.f32.mrb[7].mxu0  ;;  %3323 = vmatmul.mubr.msk.f32.gmra.mrb[112].mxu0 %vm481_vm4, %v303_v10  ;;  %v1808_v16 = vadd.f32 %v4377_v48, %v1807_v13  ;;  %v3504_v17 = vpop.f32.mrb[7].mxu1  ;;  %3662 = vmatmul.mubr.msk.f32.gmra.mrb[112].mxu1 %vm481_vm4, %v416_v11  ;;  %v311_v12 = vld [vmem:[%s3948_s23 + $0x200] sm:$0xff]  ;;  %v424_v13 = vld [vmem:[%s3948_s23 + $0x588] sm:$0xff] }
  0xf8   : > { %3325 = vmatprep.mubr.msk.f32.mxu0 %vm3891_vm0, %v3892_v1  ;;  %3664 = vmatprep.mubr.msk.f32.mxu1 %vm3891_vm0, %v3892_v1 }
  0xf9   : > { %2355 = vst.msk [vmem:[%s4390_s29 + $0x18] sm:$0xff] %vm2351_vm5, %v1243_v14  ;;  %2468 = vst.msk [vmem:[%s4390_s29 + $0x3a0] sm:$0xff] %vm2351_vm5, %v1808_v16 }
  0xfa   : > { %v1247_v20 = vpop.f32.mrb[8].mxu0  ;;  %v1812_v21 = vpop.f32.mrb[8].mxu1 }
  0xfb   : > { %v1248_v22 = vadd.f32 %v4377_v48, %v1247_v20  ;;  %v3168_v23 = vpop.f32.mrb[9].mxu0  ;;  %3326 = vmatmul.mubr.msk.f32.gmra.mrb[114].mxu0 %vm481_vm4, %v304_v18  ;;  %v1813_v24 = vadd.f32 %v4377_v48, %v1812_v21  ;;  %v3507_v25 = vpop.f32.mrb[9].mxu1  ;;  %3665 = vmatmul.mubr.msk.f32.gmra.mrb[114].mxu1 %vm481_vm4, %v417_v19  ;;  %v312_v20 = vld [vmem:[%s3948_s23 + $0x208] sm:$0xff]  ;;  %v425_v21 = vld [vmem:[%s3948_s23 + $0x590] sm:$0xff] }
  0xfc   : > { %3328 = vmatprep.mubr.msk.f32.mxu0 %vm3891_vm0, %v3892_v1  ;;  %3667 = vmatprep.mubr.msk.f32.mxu1 %vm3891_vm0, %v3892_v1 }
  0xfd   : > { %2356 = vst.msk [vmem:[%s4390_s29 + $0x20] sm:$0xff] %vm2351_vm5, %v1248_v22  ;;  %2469 = vst.msk [vmem:[%s4390_s29 + $0x3a8] sm:$0xff] %vm2351_vm5, %v1813_v24 }
  0xfe   : > { %v1252_v28 = vpop.f32.mrb[10].mxu0  ;;  %v1817_v29 = vpop.f32.mrb[10].mxu1 }
  0xff   : > { %v1253_v30 = vadd.f32 %v4377_v48, %v1252_v28  ;;  %v3171_v31 = vpop.f32.mrb[11].mxu0  ;;  %3329 = vmatmul.mubr.msk.f32.gmra.mrb[116].mxu0 %vm481_vm4, %v305_v26  ;;  %v1818_v32 = vadd.f32 %v4377_v48, %v1817_v29  ;;  %v3510_v33 = vpop.f32.mrb[11].mxu1  ;;  %3668 = vmatmul.mubr.msk.f32.gmra.mrb[116].mxu1 %vm481_vm4, %v418_v27  ;;  %v313_v28 = vld [vmem:[%s3948_s23 + $0x210] sm:$0xff]  ;;  %v426_v29 = vld [vmem:[%s3948_s23 + $0x598] sm:$0xff] }
 0x100   : > { %3331 = vmatprep.mubr.msk.f32.mxu0 %vm3891_vm0, %v3892_v1  ;;  %3670 = vmatprep.mubr.msk.f32.mxu1 %vm3891_vm0, %v3892_v1 }
 0x101   : > { %2357 = vst.msk [vmem:[%s4390_s29 + $0x28] sm:$0xff] %vm2351_vm5, %v1253_v30  ;;  %2470 = vst.msk [vmem:[%s4390_s29 + $0x3b0] sm:$0xff] %vm2351_vm5, %v1818_v32 }
 0x102   : > { %v1257_v36 = vpop.f32.mrb[12].mxu0  ;;  %v1822_v37 = vpop.f32.mrb[12].mxu1 }
 0x103   : > { %v1258_v38 = vadd.f32 %v4377_v48, %v1257_v36  ;;  %v3174_v39 = vpop.f32.mrb[13].mxu0  ;;  %3332 = vmatmul.mubr.msk.f32.gmra.mrb[118].mxu0 %vm481_vm4, %v306_v34  ;;  %v1823_v40 = vadd.f32 %v4377_v48, %v1822_v37  ;;  %v3513_v41 = vpop.f32.mrb[13].mxu1  ;;  %3671 = vmatmul.mubr.msk.f32.gmra.mrb[118].mxu1 %vm481_vm4, %v419_v35  ;;  %v314_v36 = vld [vmem:[%s3948_s23 + $0x218] sm:$0xff]  ;;  %v427_v37 = vld [vmem:[%s3948_s23 + $0x5a0] sm:$0xff] }
 0x104   : > { %3334 = vmatprep.mubr.msk.f32.mxu0 %vm3891_vm0, %v3892_v1  ;;  %3673 = vmatprep.mubr.msk.f32.mxu1 %vm3891_vm0, %v3892_v1 }
 0x105   : > { %2358 = vst.msk [vmem:[%s4390_s29 + $0x30] sm:$0xff] %vm2351_vm5, %v1258_v38  ;;  %2471 = vst.msk [vmem:[%s4390_s29 + $0x3b8] sm:$0xff] %vm2351_vm5, %v1823_v40 }
 0x106   : > { %v1262_v44 = vpop.f32.mrb[14].mxu0  ;;  %v1827_v45 = vpop.f32.mrb[14].mxu1 }
 0x107   : > { %v1263_v46 = vadd.f32 %v4377_v48, %v1262_v44  ;;  %v3177_v47 = vpop.f32.mrb[15].mxu0  ;;  %3335 = vmatmul.mubr.msk.f32.gmra.mrb[120].mxu0 %vm481_vm4, %v307_v42  ;;  %v1828_v49 = vadd.f32 %v4377_v48, %v1827_v45  ;;  %v3516_v50 = vpop.f32.mrb[15].mxu1  ;;  %3674 = vmatmul.mubr.msk.f32.gmra.mrb[120].mxu1 %vm481_vm4, %v420_v43  ;;  %v315_v44 = vld [vmem:[%s3948_s23 + $0x220] sm:$0xff]  ;;  %v428_v45 = vld [vmem:[%s3948_s23 + $0x5a8] sm:$0xff] }
 0x108   : > { %3337 = vmatprep.mubr.msk.f32.mxu0 %vm3891_vm0, %v3892_v1  ;;  %3676 = vmatprep.mubr.msk.f32.mxu1 %vm3891_vm0, %v3892_v1 }
 0x109   : > { %2359 = vst.msk [vmem:[%s4390_s29 + $0x38] sm:$0xff] %vm2351_vm5, %v1263_v46  ;;  %2472 = vst.msk [vmem:[%s4390_s29 + $0x3c0] sm:$0xff] %vm2351_vm5, %v1828_v49 }
 0x10a   : > { %v1267_v53 = vpop.f32.mrb[16].mxu0  ;;  %v1832_v54 = vpop.f32.mrb[16].mxu1 }
 0x10b   : > { %v1268_v55 = vadd.f32 %v4377_v48, %v1267_v53  ;;  %v3180_v56 = vpop.f32.mrb[17].mxu0  ;;  %3338 = vmatmul.mubr.msk.f32.gmra.mrb[122].mxu0 %vm481_vm4, %v308_v51  ;;  %v1833_v57 = vadd.f32 %v4377_v48, %v1832_v54  ;;  %v3519_v58 = vpop.f32.mrb[17].mxu1  ;;  %3677 = vmatmul.mubr.msk.f32.gmra.mrb[122].mxu1 %vm481_vm4, %v421_v52  ;;  %v316_v53 = vld [vmem:[%s3948_s23 + $0x228] sm:$0xff]  ;;  %v429_v54 = vld [vmem:[%s3948_s23 + $0x5b0] sm:$0xff] }
 0x10c   : > { %3340 = vmatprep.mubr.msk.f32.mxu0 %vm3891_vm0, %v3892_v1  ;;  %3679 = vmatprep.mubr.msk.f32.mxu1 %vm3891_vm0, %v3892_v1 }
 0x10d   : > { %2360 = vst.msk [vmem:[%s4390_s29 + $0x40] sm:$0xff] %vm2351_vm5, %v1268_v55  ;;  %2473 = vst.msk [vmem:[%s4390_s29 + $0x3c8] sm:$0xff] %vm2351_vm5, %v1833_v57 }
 0x10e   : > { %v1272_v61 = vpop.f32.mrb[18].mxu0  ;;  %v1837_v62 = vpop.f32.mrb[18].mxu1 }
 0x10f   : > { %v1273_v63 = vadd.f32 %v4377_v48, %v1272_v61  ;;  %v3183_v0 = vpop.f32.mrb[19].mxu0  ;;  %3341 = vmatmul.mubr.msk.f32.gmra.mrb[124].mxu0 %vm481_vm4, %v309_v59  ;;  %v1838_v2 = vadd.f32 %v4377_v48, %v1837_v62  ;;  %v3522_v3 = vpop.f32.mrb[19].mxu1  ;;  %3680 = vmatmul.mubr.msk.f32.gmra.mrb[124].mxu1 %vm481_vm4, %v422_v60  ;;  %v317_v61 = vld [vmem:[%s3948_s23 + $0x230] sm:$0xff]  ;;  %v430_v62 = vld [vmem:[%s3948_s23 + $0x5b8] sm:$0xff] }
 0x110   : > { %3343 = vmatprep.mubr.msk.f32.mxu0 %vm3891_vm0, %v3892_v1  ;;  %3682 = vmatprep.mubr.msk.f32.mxu1 %vm3891_vm0, %v3892_v1 }
 0x111   : > { %2361 = vst.msk [vmem:[%s4390_s29 + $0x48] sm:$0xff] %vm2351_vm5, %v1273_v63  ;;  %2474 = vst.msk [vmem:[%s4390_s29 + $0x3d0] sm:$0xff] %vm2351_vm5, %v1838_v2 }
 0x112   : > { %v1277_v6 = vpop.f32.mrb[20].mxu0  ;;  %v1842_v7 = vpop.f32.mrb[20].mxu1 }
 0x113   : > { %v1278_v8 = vadd.f32 %v4377_v48, %v1277_v6  ;;  %v3186_v9 = vpop.f32.mrb[21].mxu0  ;;  %3344 = vmatmul.mubr.msk.f32.gmra.mrb[126].mxu0 %vm481_vm4, %v310_v4  ;;  %v1843_v10 = vadd.f32 %v4377_v48, %v1842_v7  ;;  %v3525_v11 = vpop.f32.mrb[21].mxu1  ;;  %3683 = vmatmul.mubr.msk.f32.gmra.mrb[126].mxu1 %vm481_vm4, %v423_v5  ;;  %v318_v6 = vld [vmem:[%s3948_s23 + $0x238] sm:$0xff]  ;;  %v431_v7 = vld [vmem:[%s3948_s23 + $0x5c0] sm:$0xff] }
 0x114   : > { %3346 = vmatprep.mubr.msk.f32.mxu0 %vm3891_vm0, %v3892_v1  ;;  %3685 = vmatprep.mubr.msk.f32.mxu1 %vm3891_vm0, %v3892_v1 }
 0x115   : > { %2362 = vst.msk [vmem:[%s4390_s29 + $0x50] sm:$0xff] %vm2351_vm5, %v1278_v8  ;;  %2475 = vst.msk [vmem:[%s4390_s29 + $0x3d8] sm:$0xff] %vm2351_vm5, %v1843_v10 }
 0x116   : > { %v1282_v14 = vpop.f32.mrb[22].mxu0  ;;  %v1847_v15 = vpop.f32.mrb[22].mxu1 }
 0x117   : > { %v1283_v16 = vadd.f32 %v4377_v48, %v1282_v14  ;;  %v3189_v17 = vpop.f32.mrb[23].mxu0  ;;  %3347 = vmatmul.mubr.msk.f32.gmra.mrb[128].mxu0 %vm481_vm4, %v311_v12  ;;  %v1848_v18 = vadd.f32 %v4377_v48, %v1847_v15  ;;  %v3528_v19 = vpop.f32.mrb[23].mxu1  ;;  %3686 = vmatmul.mubr.msk.f32.gmra.mrb[128].mxu1 %vm481_vm4, %v424_v13  ;;  %v319_v14 = vld [vmem:[%s3948_s23 + $0x240] sm:$0xff]  ;;  %v432_v15 = vld [vmem:[%s3948_s23 + $0x5c8] sm:$0xff] }
 0x118   : > { %3349 = vmatprep.mubr.msk.f32.mxu0 %vm3891_vm0, %v3892_v1  ;;  %3688 = vmatprep.mubr.msk.f32.mxu1 %vm3891_vm0, %v3892_v1 }
 0x119   : > { %2363 = vst.msk [vmem:[%s4390_s29 + $0x58] sm:$0xff] %vm2351_vm5, %v1283_v16  ;;  %2476 = vst.msk [vmem:[%s4390_s29 + $0x3e0] sm:$0xff] %vm2351_vm5, %v1848_v18 }
 0x11a   : > { %v1287_v22 = vpop.f32.mrb[24].mxu0  ;;  %v1852_v23 = vpop.f32.mrb[24].mxu1 }
 0x11b   : > { %v1288_v24 = vadd.f32 %v4377_v48, %v1287_v22  ;;  %v3192_v25 = vpop.f32.mrb[25].mxu0  ;;  %3350 = vmatmul.mubr.msk.f32.gmra.mrb[130].mxu0 %vm481_vm4, %v312_v20  ;;  %v1853_v26 = vadd.f32 %v4377_v48, %v1852_v23  ;;  %v3531_v27 = vpop.f32.mrb[25].mxu1  ;;  %3689 = vmatmul.mubr.msk.f32.gmra.mrb[130].mxu1 %vm481_vm4, %v425_v21  ;;  %v320_v22 = vld [vmem:[%s3948_s23 + $0x248] sm:$0xff]  ;;  %v433_v23 = vld [vmem:[%s3948_s23 + $0x5d0] sm:$0xff] }
 0x11c   : > { %3352 = vmatprep.mubr.msk.f32.mxu0 %vm3891_vm0, %v3892_v1  ;;  %3691 = vmatprep.mubr.msk.f32.mxu1 %vm3891_vm0, %v3892_v1 }
 0x11d   : > { %2364 = vst.msk [vmem:[%s4390_s29 + $0x60] sm:$0xff] %vm2351_vm5, %v1288_v24  ;;  %2477 = vst.msk [vmem:[%s4390_s29 + $0x3e8] sm:$0xff] %vm2351_vm5, %v1853_v26 }
 0x11e   : > { %v1292_v30 = vpop.f32.mrb[26].mxu0  ;;  %v1857_v31 = vpop.f32.mrb[26].mxu1 }
 0x11f   : > { %v1293_v32 = vadd.f32 %v4377_v48, %v1292_v30  ;;  %v3195_v33 = vpop.f32.mrb[27].mxu0  ;;  %3353 = vmatmul.mubr.msk.f32.gmra.mrb[132].mxu0 %vm481_vm4, %v313_v28  ;;  %v1858_v34 = vadd.f32 %v4377_v48, %v1857_v31  ;;  %v3534_v35 = vpop.f32.mrb[27].mxu1  ;;  %3692 = vmatmul.mubr.msk.f32.gmra.mrb[132].mxu1 %vm481_vm4, %v426_v29  ;;  %v321_v30 = vld [vmem:[%s3948_s23 + $0x250] sm:$0xff]  ;;  %v434_v31 = vld [vmem:[%s3948_s23 + $0x5d8] sm:$0xff] }
 0x120   : > { %3355 = vmatprep.mubr.msk.f32.mxu0 %vm3891_vm0, %v3892_v1  ;;  %3694 = vmatprep.mubr.msk.f32.mxu1 %vm3891_vm0, %v3892_v1 }
 0x121   : > { %2365 = vst.msk [vmem:[%s4390_s29 + $0x68] sm:$0xff] %vm2351_vm5, %v1293_v32  ;;  %2478 = vst.msk [vmem:[%s4390_s29 + $0x3f0] sm:$0xff] %vm2351_vm5, %v1858_v34 }
 0x122   : > { %v1297_v38 = vpop.f32.mrb[28].mxu0  ;;  %v1862_v39 = vpop.f32.mrb[28].mxu1 }
 0x123   : > { %v1298_v40 = vadd.f32 %v4377_v48, %v1297_v38  ;;  %v3198_v41 = vpop.f32.mrb[29].mxu0  ;;  %3356 = vmatmul.mubr.msk.f32.gmra.mrb[134].mxu0 %vm481_vm4, %v314_v36  ;;  %v1863_v42 = vadd.f32 %v4377_v48, %v1862_v39  ;;  %v3537_v43 = vpop.f32.mrb[29].mxu1  ;;  %3695 = vmatmul.mubr.msk.f32.gmra.mrb[134].mxu1 %vm481_vm4, %v427_v37  ;;  %v322_v38 = vld [vmem:[%s3948_s23 + $0x258] sm:$0xff]  ;;  %v435_v39 = vld [vmem:[%s3948_s23 + $0x5e0] sm:$0xff] }
 0x124   : > { %3358 = vmatprep.mubr.msk.f32.mxu0 %vm3891_vm0, %v3892_v1  ;;  %3697 = vmatprep.mubr.msk.f32.mxu1 %vm3891_vm0, %v3892_v1 }
 0x125   : > { %2366 = vst.msk [vmem:[%s4390_s29 + $0x70] sm:$0xff] %vm2351_vm5, %v1298_v40  ;;  %2479 = vst.msk [vmem:[%s4390_s29 + $0x3f8] sm:$0xff] %vm2351_vm5, %v1863_v42 }
 0x126   : > { %v1302_v46 = vpop.f32.mrb[30].mxu0  ;;  %v1867_v47 = vpop.f32.mrb[30].mxu1 }
 0x127   : > { %v1303_v49 = vadd.f32 %v4377_v48, %v1302_v46  ;;  %v3201_v50 = vpop.f32.mrb[31].mxu0  ;;  %3359 = vmatmul.mubr.msk.f32.gmra.mrb[136].mxu0 %vm481_vm4, %v315_v44  ;;  %v1868_v51 = vadd.f32 %v4377_v48, %v1867_v47  ;;  %v3540_v52 = vpop.f32.mrb[31].mxu1  ;;  %3698 = vmatmul.mubr.msk.f32.gmra.mrb[136].mxu1 %vm481_vm4, %v428_v45  ;;  %v323_v46 = vld [vmem:[%s3948_s23 + $0x260] sm:$0xff]  ;;  %v436_v47 = vld [vmem:[%s3948_s23 + $0x5e8] sm:$0xff] }
 0x128   : > { %3361 = vmatprep.mubr.msk.f32.mxu0 %vm3891_vm0, %v3892_v1  ;;  %3700 = vmatprep.mubr.msk.f32.mxu1 %vm3891_vm0, %v3892_v1 }
 0x129   : > { %2367 = vst.msk [vmem:[%s4390_s29 + $0x78] sm:$0xff] %vm2351_vm5, %v1303_v49  ;;  %2480 = vst.msk [vmem:[%s4390_s29 + $0x400] sm:$0xff] %vm2351_vm5, %v1868_v51 }
 0x12a   : > { %v1307_v55 = vpop.f32.mrb[32].mxu0  ;;  %v1872_v56 = vpop.f32.mrb[32].mxu1 }
 0x12b   : > { %v1308_v57 = vadd.f32 %v4377_v48, %v1307_v55  ;;  %v3204_v58 = vpop.f32.mrb[33].mxu0  ;;  %3362 = vmatmul.mubr.msk.f32.gmra.mrb[138].mxu0 %vm481_vm4, %v316_v53  ;;  %v1873_v59 = vadd.f32 %v4377_v48, %v1872_v56  ;;  %v3543_v60 = vpop.f32.mrb[33].mxu1  ;;  %3701 = vmatmul.mubr.msk.f32.gmra.mrb[138].mxu1 %vm481_vm4, %v429_v54  ;;  %v324_v55 = vld [vmem:[%s3948_s23 + $0x268] sm:$0xff]  ;;  %v437_v56 = vld [vmem:[%s3948_s23 + $0x5f0] sm:$0xff] }
 0x12c   : > { %3364 = vmatprep.mubr.msk.f32.mxu0 %vm3891_vm0, %v3892_v1  ;;  %3703 = vmatprep.mubr.msk.f32.mxu1 %vm3891_vm0, %v3892_v1 }
 0x12d   : > { %2368 = vst.msk [vmem:[%s4390_s29 + $0x80] sm:$0xff] %vm2351_vm5, %v1308_v57  ;;  %2481 = vst.msk [vmem:[%s4390_s29 + $0x408] sm:$0xff] %vm2351_vm5, %v1873_v59 }
 0x12e   : > { %v1312_v63 = vpop.f32.mrb[34].mxu0  ;;  %v1877_v0 = vpop.f32.mrb[34].mxu1 }
 0x12f   : > { %v1313_v2 = vadd.f32 %v4377_v48, %v1312_v63  ;;  %v3207_v3 = vpop.f32.mrb[35].mxu0  ;;  %3365 = vmatmul.mubr.msk.f32.gmra.mrb[140].mxu0 %vm481_vm4, %v317_v61  ;;  %v1878_v4 = vadd.f32 %v4377_v48, %v1877_v0  ;;  %v3546_v5 = vpop.f32.mrb[35].mxu1  ;;  %3704 = vmatmul.mubr.msk.f32.gmra.mrb[140].mxu1 %vm481_vm4, %v430_v62  ;;  %v325_v63 = vld [vmem:[%s3948_s23 + $0x270] sm:$0xff]  ;;  %v438_v0 = vld [vmem:[%s3948_s23 + $0x5f8] sm:$0xff] }
 0x130   : > { %3367 = vmatprep.mubr.msk.f32.mxu0 %vm3891_vm0, %v3892_v1  ;;  %3706 = vmatprep.mubr.msk.f32.mxu1 %vm3891_vm0, %v3892_v1 }
 0x131   : > { %2369 = vst.msk [vmem:[%s4390_s29 + $0x88] sm:$0xff] %vm2351_vm5, %v1313_v2  ;;  %2482 = vst.msk [vmem:[%s4390_s29 + $0x410] sm:$0xff] %vm2351_vm5, %v1878_v4 }
 0x132   : > { %v1317_v8 = vpop.f32.mrb[36].mxu0  ;;  %v1882_v9 = vpop.f32.mrb[36].mxu1 }
 0x133   : > { %v1318_v10 = vadd.f32 %v4377_v48, %v1317_v8  ;;  %v3210_v11 = vpop.f32.mrb[37].mxu0  ;;  %3368 = vmatmul.mubr.msk.f32.gmra.mrb[142].mxu0 %vm481_vm4, %v318_v6  ;;  %v1883_v12 = vadd.f32 %v4377_v48, %v1882_v9  ;;  %v3549_v13 = vpop.f32.mrb[37].mxu1  ;;  %3707 = vmatmul.mubr.msk.f32.gmra.mrb[142].mxu1 %vm481_vm4, %v431_v7  ;;  %v326_v8 = vld [vmem:[%s3948_s23 + $0x278] sm:$0xff]  ;;  %v439_v9 = vld [vmem:[%s3948_s23 + $0x600] sm:$0xff] }
 0x134   : > { %3370 = vmatprep.mubr.msk.f32.mxu0 %vm3891_vm0, %v3892_v1  ;;  %3709 = vmatprep.mubr.msk.f32.mxu1 %vm3891_vm0, %v3892_v1 }
 0x135   : > { %2370 = vst.msk [vmem:[%s4390_s29 + $0x90] sm:$0xff] %vm2351_vm5, %v1318_v10  ;;  %2483 = vst.msk [vmem:[%s4390_s29 + $0x418] sm:$0xff] %vm2351_vm5, %v1883_v12 }
 0x136   : > { %v1322_v16 = vpop.f32.mrb[38].mxu0  ;;  %v1887_v17 = vpop.f32.mrb[38].mxu1 }
 0x137   : > { %v1323_v18 = vadd.f32 %v4377_v48, %v1322_v16  ;;  %v3213_v19 = vpop.f32.mrb[39].mxu0  ;;  %3371 = vmatmul.mubr.msk.f32.gmra.mrb[144].mxu0 %vm481_vm4, %v319_v14  ;;  %v1888_v20 = vadd.f32 %v4377_v48, %v1887_v17  ;;  %v3552_v21 = vpop.f32.mrb[39].mxu1  ;;  %3710 = vmatmul.mubr.msk.f32.gmra.mrb[144].mxu1 %vm481_vm4, %v432_v15  ;;  %v327_v16 = vld [vmem:[%s3948_s23 + $0x280] sm:$0xff]  ;;  %v440_v17 = vld [vmem:[%s3948_s23 + $0x608] sm:$0xff] }
 0x138   : > { %3373 = vmatprep.mubr.msk.f32.mxu0 %vm3891_vm0, %v3892_v1  ;;  %3712 = vmatprep.mubr.msk.f32.mxu1 %vm3891_vm0, %v3892_v1 }
 0x139   : > { %2371 = vst.msk [vmem:[%s4390_s29 + $0x98] sm:$0xff] %vm2351_vm5, %v1323_v18  ;;  %2484 = vst.msk [vmem:[%s4390_s29 + $0x420] sm:$0xff] %vm2351_vm5, %v1888_v20 }
 0x13a   : > { %v1327_v24 = vpop.f32.mrb[40].mxu0  ;;  %v1892_v25 = vpop.f32.mrb[40].mxu1 }
 0x13b   : > { %v1328_v26 = vadd.f32 %v4377_v48, %v1327_v24  ;;  %v3216_v27 = vpop.f32.mrb[41].mxu0  ;;  %3374 = vmatmul.mubr.msk.f32.gmra.mrb[146].mxu0 %vm481_vm4, %v320_v22  ;;  %v1893_v28 = vadd.f32 %v4377_v48, %v1892_v25  ;;  %v3555_v29 = vpop.f32.mrb[41].mxu1  ;;  %3713 = vmatmul.mubr.msk.f32.gmra.mrb[146].mxu1 %vm481_vm4, %v433_v23  ;;  %v328_v24 = vld [vmem:[%s3948_s23 + $0x288] sm:$0xff]  ;;  %v441_v25 = vld [vmem:[%s3948_s23 + $0x610] sm:$0xff] }
 0x13c   : > { %3376 = vmatprep.mubr.msk.f32.mxu0 %vm3891_vm0, %v3892_v1  ;;  %3715 = vmatprep.mubr.msk.f32.mxu1 %vm3891_vm0, %v3892_v1 }
 0x13d   : > { %2372 = vst.msk [vmem:[%s4390_s29 + $0xa0] sm:$0xff] %vm2351_vm5, %v1328_v26  ;;  %2485 = vst.msk [vmem:[%s4390_s29 + $0x428] sm:$0xff] %vm2351_vm5, %v1893_v28 }
 0x13e   : > { %v1332_v32 = vpop.f32.mrb[42].mxu0  ;;  %v1897_v33 = vpop.f32.mrb[42].mxu1 }
 0x13f   : > { %v1333_v34 = vadd.f32 %v4377_v48, %v1332_v32  ;;  %v3219_v35 = vpop.f32.mrb[43].mxu0  ;;  %3377 = vmatmul.mubr.msk.f32.gmra.mrb[148].mxu0 %vm481_vm4, %v321_v30  ;;  %v1898_v36 = vadd.f32 %v4377_v48, %v1897_v33  ;;  %v3558_v37 = vpop.f32.mrb[43].mxu1  ;;  %3716 = vmatmul.mubr.msk.f32.gmra.mrb[148].mxu1 %vm481_vm4, %v434_v31  ;;  %v329_v32 = vld [vmem:[%s3948_s23 + $0x290] sm:$0xff]  ;;  %v442_v33 = vld [vmem:[%s3948_s23 + $0x618] sm:$0xff] }
 0x140   : > { %3379 = vmatprep.mubr.msk.f32.mxu0 %vm3891_vm0, %v3892_v1  ;;  %3718 = vmatprep.mubr.msk.f32.mxu1 %vm3891_vm0, %v3892_v1 }
 0x141   : > { %2373 = vst.msk [vmem:[%s4390_s29 + $0xa8] sm:$0xff] %vm2351_vm5, %v1333_v34  ;;  %2486 = vst.msk [vmem:[%s4390_s29 + $0x430] sm:$0xff] %vm2351_vm5, %v1898_v36 }
 0x142   : > { %v1337_v40 = vpop.f32.mrb[44].mxu0  ;;  %v1902_v41 = vpop.f32.mrb[44].mxu1 }
 0x143   : > { %v1338_v42 = vadd.f32 %v4377_v48, %v1337_v40  ;;  %v3222_v43 = vpop.f32.mrb[45].mxu0  ;;  %3380 = vmatmul.mubr.msk.f32.gmra.mrb[150].mxu0 %vm481_vm4, %v322_v38  ;;  %v1903_v44 = vadd.f32 %v4377_v48, %v1902_v41  ;;  %v3561_v45 = vpop.f32.mrb[45].mxu1  ;;  %3719 = vmatmul.mubr.msk.f32.gmra.mrb[150].mxu1 %vm481_vm4, %v435_v39  ;;  %v330_v40 = vld [vmem:[%s3948_s23 + $0x298] sm:$0xff]  ;;  %v443_v41 = vld [vmem:[%s3948_s23 + $0x620] sm:$0xff] }
 0x144   : > { %3382 = vmatprep.mubr.msk.f32.mxu0 %vm3891_vm0, %v3892_v1  ;;  %3721 = vmatprep.mubr.msk.f32.mxu1 %vm3891_vm0, %v3892_v1 }
 0x145   : > { %2374 = vst.msk [vmem:[%s4390_s29 + $0xb0] sm:$0xff] %vm2351_vm5, %v1338_v42  ;;  %2487 = vst.msk [vmem:[%s4390_s29 + $0x438] sm:$0xff] %vm2351_vm5, %v1903_v44 }
 0x146   : > { %v1342_v49 = vpop.f32.mrb[46].mxu0  ;;  %v1907_v50 = vpop.f32.mrb[46].mxu1 }
 0x147   : > { %v1343_v51 = vadd.f32 %v4377_v48, %v1342_v49  ;;  %v3225_v52 = vpop.f32.mrb[47].mxu0  ;;  %3383 = vmatmul.mubr.msk.f32.gmra.mrb[152].mxu0 %vm481_vm4, %v323_v46  ;;  %v1908_v53 = vadd.f32 %v4377_v48, %v1907_v50  ;;  %v3564_v54 = vpop.f32.mrb[47].mxu1  ;;  %3722 = vmatmul.mubr.msk.f32.gmra.mrb[152].mxu1 %vm481_vm4, %v436_v47  ;;  %v331_v49 = vld [vmem:[%s3948_s23 + $0x2a0] sm:$0xff]  ;;  %v444_v50 = vld [vmem:[%s3948_s23 + $0x628] sm:$0xff] }
 0x148   : > { %3385 = vmatprep.mubr.msk.f32.mxu0 %vm3891_vm0, %v3892_v1  ;;  %3724 = vmatprep.mubr.msk.f32.mxu1 %vm3891_vm0, %v3892_v1 }
 0x149   : > { %2375 = vst.msk [vmem:[%s4390_s29 + $0xb8] sm:$0xff] %vm2351_vm5, %v1343_v51  ;;  %2488 = vst.msk [vmem:[%s4390_s29 + $0x440] sm:$0xff] %vm2351_vm5, %v1908_v53 }
 0x14a   : > { %v1347_v57 = vpop.f32.mrb[48].mxu0  ;;  %v1912_v58 = vpop.f32.mrb[48].mxu1 }
 0x14b   : > { %v1348_v59 = vadd.f32 %v4377_v48, %v1347_v57  ;;  %v3228_v60 = vpop.f32.mrb[49].mxu0  ;;  %3386 = vmatmul.mubr.msk.f32.gmra.mrb[154].mxu0 %vm481_vm4, %v324_v55  ;;  %v1913_v61 = vadd.f32 %v4377_v48, %v1912_v58  ;;  %v3567_v62 = vpop.f32.mrb[49].mxu1  ;;  %3725 = vmatmul.mubr.msk.f32.gmra.mrb[154].mxu1 %vm481_vm4, %v437_v56  ;;  %v332_v57 = vld [vmem:[%s3948_s23 + $0x2a8] sm:$0xff]  ;;  %v445_v58 = vld [vmem:[%s3948_s23 + $0x630] sm:$0xff] }
 0x14c   : > { %3388 = vmatprep.mubr.msk.f32.mxu0 %vm3891_vm0, %v3892_v1  ;;  %3727 = vmatprep.mubr.msk.f32.mxu1 %vm3891_vm0, %v3892_v1 }
 0x14d   : > { %2376 = vst.msk [vmem:[%s4390_s29 + $0xc0] sm:$0xff] %vm2351_vm5, %v1348_v59  ;;  %2489 = vst.msk [vmem:[%s4390_s29 + $0x448] sm:$0xff] %vm2351_vm5, %v1913_v61 }
 0x14e   : > { %v1352_v2 = vpop.f32.mrb[50].mxu0  ;;  %v1917_v3 = vpop.f32.mrb[50].mxu1 }
 0x14f   : > { %v1353_v4 = vadd.f32 %v4377_v48, %v1352_v2  ;;  %v3231_v5 = vpop.f32.mrb[51].mxu0  ;;  %3389 = vmatmul.mubr.msk.f32.gmra.mrb[156].mxu0 %vm481_vm4, %v325_v63  ;;  %v1918_v6 = vadd.f32 %v4377_v48, %v1917_v3  ;;  %v3570_v7 = vpop.f32.mrb[51].mxu1  ;;  %3728 = vmatmul.mubr.msk.f32.gmra.mrb[156].mxu1 %vm481_vm4, %v438_v0  ;;  %v333_v2 = vld [vmem:[%s3948_s23 + $0x2b0] sm:$0xff]  ;;  %v446_v3 = vld [vmem:[%s3948_s23 + $0x638] sm:$0xff] }
 0x150   : > { %3391 = vmatprep.mubr.msk.f32.mxu0 %vm3891_vm0, %v3892_v1  ;;  %3730 = vmatprep.mubr.msk.f32.mxu1 %vm3891_vm0, %v3892_v1 }
 0x151   : > { %2377 = vst.msk [vmem:[%s4390_s29 + $0xc8] sm:$0xff] %vm2351_vm5, %v1353_v4  ;;  %2490 = vst.msk [vmem:[%s4390_s29 + $0x450] sm:$0xff] %vm2351_vm5, %v1918_v6 }
 0x152   : > { %v1357_v10 = vpop.f32.mrb[52].mxu0  ;;  %v1922_v11 = vpop.f32.mrb[52].mxu1 }
 0x153   : > { %v1358_v12 = vadd.f32 %v4377_v48, %v1357_v10  ;;  %v3234_v13 = vpop.f32.mrb[53].mxu0  ;;  %3392 = vmatmul.mubr.msk.f32.gmra.mrb[158].mxu0 %vm481_vm4, %v326_v8  ;;  %v1923_v14 = vadd.f32 %v4377_v48, %v1922_v11  ;;  %v3573_v15 = vpop.f32.mrb[53].mxu1  ;;  %3731 = vmatmul.mubr.msk.f32.gmra.mrb[158].mxu1 %vm481_vm4, %v439_v9  ;;  %v334_v10 = vld [vmem:[%s3948_s23 + $0x2b8] sm:$0xff]  ;;  %v447_v11 = vld [vmem:[%s3948_s23 + $0x640] sm:$0xff] }
 0x154   : > { %3394 = vmatprep.mubr.msk.f32.mxu0 %vm3891_vm0, %v3892_v1  ;;  %3733 = vmatprep.mubr.msk.f32.mxu1 %vm3891_vm0, %v3892_v1 }
 0x155   : > { %2378 = vst.msk [vmem:[%s4390_s29 + $0xd0] sm:$0xff] %vm2351_vm5, %v1358_v12  ;;  %2491 = vst.msk [vmem:[%s4390_s29 + $0x458] sm:$0xff] %vm2351_vm5, %v1923_v14 }
 0x156   : > { %v1362_v18 = vpop.f32.mrb[54].mxu0  ;;  %v1927_v19 = vpop.f32.mrb[54].mxu1 }
 0x157   : > { %v1363_v20 = vadd.f32 %v4377_v48, %v1362_v18  ;;  %v3237_v21 = vpop.f32.mrb[55].mxu0  ;;  %3395 = vmatmul.mubr.msk.f32.gmra.mrb[160].mxu0 %vm481_vm4, %v327_v16  ;;  %v1928_v22 = vadd.f32 %v4377_v48, %v1927_v19  ;;  %v3576_v23 = vpop.f32.mrb[55].mxu1  ;;  %3734 = vmatmul.mubr.msk.f32.gmra.mrb[160].mxu1 %vm481_vm4, %v440_v17  ;;  %v335_v18 = vld [vmem:[%s3948_s23 + $0x2c0] sm:$0xff]  ;;  %v448_v19 = vld [vmem:[%s3948_s23 + $0x648] sm:$0xff] }
 0x158   : > { %3397 = vmatprep.mubr.msk.f32.mxu0 %vm3891_vm0, %v3892_v1  ;;  %3736 = vmatprep.mubr.msk.f32.mxu1 %vm3891_vm0, %v3892_v1 }
 0x159   : > { %2379 = vst.msk [vmem:[%s4390_s29 + $0xd8] sm:$0xff] %vm2351_vm5, %v1363_v20  ;;  %2492 = vst.msk [vmem:[%s4390_s29 + $0x460] sm:$0xff] %vm2351_vm5, %v1928_v22 }
 0x15a   : > { %v1367_v26 = vpop.f32.mrb[56].mxu0  ;;  %v1932_v27 = vpop.f32.mrb[56].mxu1 }
 0x15b   : > { %v1368_v28 = vadd.f32 %v4377_v48, %v1367_v26  ;;  %v3240_v29 = vpop.f32.mrb[57].mxu0  ;;  %3398 = vmatmul.mubr.msk.f32.gmra.mrb[162].mxu0 %vm481_vm4, %v328_v24  ;;  %v1933_v30 = vadd.f32 %v4377_v48, %v1932_v27  ;;  %v3579_v31 = vpop.f32.mrb[57].mxu1  ;;  %3737 = vmatmul.mubr.msk.f32.gmra.mrb[162].mxu1 %vm481_vm4, %v441_v25  ;;  %v336_v26 = vld [vmem:[%s3948_s23 + $0x2c8] sm:$0xff]  ;;  %v449_v27 = vld [vmem:[%s3948_s23 + $0x650] sm:$0xff] }
 0x15c   : > { %3400 = vmatprep.mubr.msk.f32.mxu0 %vm3891_vm0, %v3892_v1  ;;  %3739 = vmatprep.mubr.msk.f32.mxu1 %vm3891_vm0, %v3892_v1  ;;  %v4897_v29 = vld [vmem:[%s4372_s26] ss:$0 sm:$0xff] }
 0x15d   : > { %2380 = vst.msk [vmem:[%s4390_s29 + $0xe0] sm:$0xff] %vm2351_vm5, %v1368_v28  ;;  %2493 = vst.msk [vmem:[%s4390_s29 + $0x468] sm:$0xff] %vm2351_vm5, %v1933_v30 }
 0x15e   : > { %v1372_v34 = vpop.f32.mrb[58].mxu0  ;;  %v1937_v35 = vpop.f32.mrb[58].mxu1 }
 0x15f   : > { %v1373_v36 = vadd.f32 %v4377_v48, %v1372_v34  ;;  %v3243_v37 = vpop.f32.mrb[59].mxu0  ;;  %3401 = vmatmul.mubr.msk.f32.gmra.mrb[164].mxu0 %vm481_vm4, %v329_v32  ;;  %v1938_v38 = vadd.f32 %v4377_v48, %v1937_v35  ;;  %v3582_v39 = vpop.f32.mrb[59].mxu1  ;;  %3740 = vmatmul.mubr.msk.f32.gmra.mrb[164].mxu1 %vm481_vm4, %v442_v33  ;;  %v337_v34 = vld [vmem:[%s3948_s23 + $0x2d0] sm:$0xff]  ;;  %v450_v35 = vld [vmem:[%s3948_s23 + $0x658] sm:$0xff] }
 0x160   : > { %3403 = vmatprep.mubr.msk.f32.mxu0 %vm3891_vm0, %v3892_v1  ;;  %3742 = vmatprep.mubr.msk.f32.mxu1 %vm3891_vm0, %v3892_v1 }
 0x161   : > { %2381 = vst.msk [vmem:[%s4390_s29 + $0xe8] sm:$0xff] %vm2351_vm5, %v1373_v36  ;;  %2494 = vst.msk [vmem:[%s4390_s29 + $0x470] sm:$0xff] %vm2351_vm5, %v1938_v38 }
 0x162   : > { %v1377_v42 = vpop.f32.mrb[60].mxu0  ;;  %v1942_v43 = vpop.f32.mrb[60].mxu1 }
 0x163   : > { %v1378_v44 = vadd.f32 %v4377_v48, %v1377_v42  ;;  %v3246_v45 = vpop.f32.mrb[61].mxu0  ;;  %3404 = vmatmul.mubr.msk.f32.gmra.mrb[166].mxu0 %vm481_vm4, %v330_v40  ;;  %v1943_v46 = vadd.f32 %v4377_v48, %v1942_v43  ;;  %v3585_v47 = vpop.f32.mrb[61].mxu1  ;;  %3743 = vmatmul.mubr.msk.f32.gmra.mrb[166].mxu1 %vm481_vm4, %v443_v41  ;;  %v338_v42 = vld [vmem:[%s3948_s23 + $0x2d8] sm:$0xff]  ;;  %v451_v43 = vld [vmem:[%s3948_s23 + $0x660] sm:$0xff] }
 0x164   : > { %3406 = vmatprep.mubr.msk.f32.mxu0 %vm3891_vm0, %v3892_v1  ;;  %3745 = vmatprep.mubr.msk.f32.mxu1 %vm3891_vm0, %v3892_v1 }
 0x165   : > { %2382 = vst.msk [vmem:[%s4390_s29 + $0xf0] sm:$0xff] %vm2351_vm5, %v1378_v44  ;;  %2495 = vst.msk [vmem:[%s4390_s29 + $0x478] sm:$0xff] %vm2351_vm5, %v1943_v46 }
 0x166   : > { %v1382_v51 = vpop.f32.mrb[62].mxu0  ;;  %v1947_v52 = vpop.f32.mrb[62].mxu1 }
 0x167   : > { %v1383_v53 = vadd.f32 %v4377_v48, %v1382_v51  ;;  %v3249_v54 = vpop.f32.mrb[63].mxu0  ;;  %3407 = vmatmul.mubr.msk.f32.gmra.mrb[168].mxu0 %vm481_vm4, %v331_v49  ;;  %v1948_v55 = vadd.f32 %v4377_v48, %v1947_v52  ;;  %v3588_v56 = vpop.f32.mrb[63].mxu1  ;;  %3746 = vmatmul.mubr.msk.f32.gmra.mrb[168].mxu1 %vm481_vm4, %v444_v50  ;;  %v339_v51 = vld [vmem:[%s3948_s23 + $0x2e0] sm:$0xff]  ;;  %v452_v52 = vld [vmem:[%s3948_s23 + $0x668] sm:$0xff] }
 0x168   : > { %3409 = vmatprep.mubr.msk.f32.mxu0 %vm3891_vm0, %v3892_v1  ;;  %3748 = vmatprep.mubr.msk.f32.mxu1 %vm3891_vm0, %v3892_v1 }
 0x169   : > { %2383 = vst.msk [vmem:[%s4390_s29 + $0xf8] sm:$0xff] %vm2351_vm5, %v1383_v53  ;;  %2496 = vst.msk [vmem:[%s4390_s29 + $0x480] sm:$0xff] %vm2351_vm5, %v1948_v55 }
 0x16a   : > { %v1387_v59 = vpop.f32.mrb[64].mxu0  ;;  %v1952_v60 = vpop.f32.mrb[64].mxu1 }
 0x16b   : > { %v1388_v61 = vadd.f32 %v4377_v48, %v1387_v59  ;;  %v3252_v62 = vpop.f32.mrb[65].mxu0  ;;  %3410 = vmatmul.mubr.msk.f32.gmra.mrb[170].mxu0 %vm481_vm4, %v332_v57  ;;  %v1953_v63 = vadd.f32 %v4377_v48, %v1952_v60  ;;  %v3591_v0 = vpop.f32.mrb[65].mxu1  ;;  %3749 = vmatmul.mubr.msk.f32.gmra.mrb[170].mxu1 %vm481_vm4, %v445_v58  ;;  %v340_v59 = vld [vmem:[%s3948_s23 + $0x2e8] sm:$0xff]  ;;  %v453_v60 = vld [vmem:[%s3948_s23 + $0x670] sm:$0xff] }
 0x16c   : > { %3412 = vmatprep.mubr.msk.f32.mxu0 %vm3891_vm0, %v3892_v1  ;;  %3751 = vmatprep.mubr.msk.f32.mxu1 %vm3891_vm0, %v3892_v1 }
 0x16d   : > { %2384 = vst.msk [vmem:[%s4390_s29 + $0x100] sm:$0xff] %vm2351_vm5, %v1388_v61  ;;  %2497 = vst.msk [vmem:[%s4390_s29 + $0x488] sm:$0xff] %vm2351_vm5, %v1953_v63 }
 0x16e   : > { %v1392_v4 = vpop.f32.mrb[66].mxu0  ;;  %v1957_v5 = vpop.f32.mrb[66].mxu1 }
 0x16f   : > { %v1393_v6 = vadd.f32 %v4377_v48, %v1392_v4  ;;  %v3255_v7 = vpop.f32.mrb[67].mxu0  ;;  %3413 = vmatmul.mubr.msk.f32.gmra.mrb[172].mxu0 %vm481_vm4, %v333_v2  ;;  %v1958_v8 = vadd.f32 %v4377_v48, %v1957_v5  ;;  %v3594_v9 = vpop.f32.mrb[67].mxu1  ;;  %3752 = vmatmul.mubr.msk.f32.gmra.mrb[172].mxu1 %vm481_vm4, %v446_v3  ;;  %v341_v4 = vld [vmem:[%s3948_s23 + $0x2f0] sm:$0xff]  ;;  %v454_v5 = vld [vmem:[%s3948_s23 + $0x678] sm:$0xff] }
 0x170   : > { %3415 = vmatprep.mubr.msk.f32.mxu0 %vm3891_vm0, %v3892_v1  ;;  %3754 = vmatprep.mubr.msk.f32.mxu1 %vm3891_vm0, %v3892_v1 }
 0x171   : > { %2385 = vst.msk [vmem:[%s4390_s29 + $0x108] sm:$0xff] %vm2351_vm5, %v1393_v6  ;;  %2498 = vst.msk [vmem:[%s4390_s29 + $0x490] sm:$0xff] %vm2351_vm5, %v1958_v8 }
 0x172   : > { %v1397_v12 = vpop.f32.mrb[68].mxu0  ;;  %v1962_v13 = vpop.f32.mrb[68].mxu1 }
 0x173   : > { %v1398_v14 = vadd.f32 %v4377_v48, %v1397_v12  ;;  %v3258_v15 = vpop.f32.mrb[69].mxu0  ;;  %3416 = vmatmul.mubr.msk.f32.gmra.mrb[174].mxu0 %vm481_vm4, %v334_v10  ;;  %v1963_v16 = vadd.f32 %v4377_v48, %v1962_v13  ;;  %v3597_v17 = vpop.f32.mrb[69].mxu1  ;;  %3755 = vmatmul.mubr.msk.f32.gmra.mrb[174].mxu1 %vm481_vm4, %v447_v11  ;;  %v342_v12 = vld [vmem:[%s3948_s23 + $0x2f8] sm:$0xff]  ;;  %v455_v13 = vld [vmem:[%s3948_s23 + $0x680] sm:$0xff] }
 0x174   : > { %3418 = vmatprep.mubr.msk.f32.mxu0 %vm3891_vm0, %v3892_v1  ;;  %3757 = vmatprep.mubr.msk.f32.mxu1 %vm3891_vm0, %v3892_v1 }
 0x175   : > { %2386 = vst.msk [vmem:[%s4390_s29 + $0x110] sm:$0xff] %vm2351_vm5, %v1398_v14  ;;  %2499 = vst.msk [vmem:[%s4390_s29 + $0x498] sm:$0xff] %vm2351_vm5, %v1963_v16 }
 0x176   : > { %v1402_v20 = vpop.f32.mrb[70].mxu0  ;;  %v1967_v21 = vpop.f32.mrb[70].mxu1 }
 0x177   : > { %v1403_v22 = vadd.f32 %v4377_v48, %v1402_v20  ;;  %v3261_v23 = vpop.f32.mrb[71].mxu0  ;;  %3419 = vmatmul.mubr.msk.f32.gmra.mrb[176].mxu0 %vm481_vm4, %v335_v18  ;;  %v1968_v24 = vadd.f32 %v4377_v48, %v1967_v21  ;;  %v3600_v25 = vpop.f32.mrb[71].mxu1  ;;  %3758 = vmatmul.mubr.msk.f32.gmra.mrb[176].mxu1 %vm481_vm4, %v448_v19  ;;  %v343_v20 = vld [vmem:[%s3948_s23 + $0x300] sm:$0xff]  ;;  %v456_v21 = vld [vmem:[%s3948_s23 + $0x688] sm:$0xff] }
 0x178   : > { %3421 = vmatprep.mubr.msk.f32.mxu0 %vm3891_vm0, %v3892_v1  ;;  %3760 = vmatprep.mubr.msk.f32.mxu1 %vm3891_vm0, %v3892_v1 }
 0x179   : > { %2387 = vst.msk [vmem:[%s4390_s29 + $0x118] sm:$0xff] %vm2351_vm5, %v1403_v22  ;;  %2500 = vst.msk [vmem:[%s4390_s29 + $0x4a0] sm:$0xff] %vm2351_vm5, %v1968_v24 }
 0x17a   : > { %v1407_v48 = vpop.f32.mrb[72].mxu0  ;;  %v1972_v28 = vpop.f32.mrb[72].mxu1 }
 0x17b   : > { %v1408_v30 = vadd.f32 %v4897_v29, %v1407_v48  ;;  %v3264_v31 = vpop.f32.mrb[73].mxu0  ;;  %3422 = vmatmul.mubr.msk.f32.gmra.mrb[178].mxu0 %vm481_vm4, %v336_v26  ;;  %v1973_v32 = vadd.f32 %v4897_v29, %v1972_v28  ;;  %v3603_v33 = vpop.f32.mrb[73].mxu1  ;;  %3761 = vmatmul.mubr.msk.f32.gmra.mrb[178].mxu1 %vm481_vm4, %v449_v27  ;;  %v344_v48 = vld [vmem:[%s3948_s23 + $0x308] sm:$0xff]  ;;  %v457_v28 = vld [vmem:[%s3948_s23 + $0x690] sm:$0xff] }
 0x17c   : > { %3424 = vmatprep.mubr.msk.f32.mxu0 %vm3891_vm0, %v3892_v1  ;;  %3763 = vmatprep.mubr.msk.f32.mxu1 %vm3891_vm0, %v3892_v1 }
 0x17d   : > { %2388 = vst.msk [vmem:[%s4390_s29 + $0x120] sm:$0xff] %vm2351_vm5, %v1408_v30  ;;  %2501 = vst.msk [vmem:[%s4390_s29 + $0x4a8] sm:$0xff] %vm2351_vm5, %v1973_v32 }
 0x17e   : > { %v1412_v36 = vpop.f32.mrb[74].mxu0  ;;  %v1977_v37 = vpop.f32.mrb[74].mxu1 }
 0x17f   : > { %v1413_v38 = vadd.f32 %v4897_v29, %v1412_v36  ;;  %v3267_v39 = vpop.f32.mrb[75].mxu0  ;;  %3425 = vmatmul.mubr.msk.f32.gmra.mrb[180].mxu0 %vm481_vm4, %v337_v34  ;;  %v1978_v40 = vadd.f32 %v4897_v29, %v1977_v37  ;;  %v3606_v41 = vpop.f32.mrb[75].mxu1  ;;  %3764 = vmatmul.mubr.msk.f32.gmra.mrb[180].mxu1 %vm481_vm4, %v450_v35  ;;  %v345_v36 = vld [vmem:[%s3948_s23 + $0x310] sm:$0xff]  ;;  %v458_v37 = vld [vmem:[%s3948_s23 + $0x698] sm:$0xff] }
 0x180   : > { %3427 = vmatprep.mubr.msk.f32.mxu0 %vm3891_vm0, %v3892_v1  ;;  %3766 = vmatprep.mubr.msk.f32.mxu1 %vm3891_vm0, %v3892_v1 }
 0x181   : > { %2389 = vst.msk [vmem:[%s4390_s29 + $0x128] sm:$0xff] %vm2351_vm5, %v1413_v38  ;;  %2502 = vst.msk [vmem:[%s4390_s29 + $0x4b0] sm:$0xff] %vm2351_vm5, %v1978_v40 }
 0x182   : > { %v1417_v44 = vpop.f32.mrb[76].mxu0  ;;  %v1982_v45 = vpop.f32.mrb[76].mxu1 }
 0x183   : > { %v1418_v46 = vadd.f32 %v4897_v29, %v1417_v44  ;;  %v3270_v47 = vpop.f32.mrb[77].mxu0  ;;  %3428 = vmatmul.mubr.msk.f32.gmra.mrb[182].mxu0 %vm481_vm4, %v338_v42  ;;  %v1983_v49 = vadd.f32 %v4897_v29, %v1982_v45  ;;  %v3609_v50 = vpop.f32.mrb[77].mxu1  ;;  %3767 = vmatmul.mubr.msk.f32.gmra.mrb[182].mxu1 %vm481_vm4, %v451_v43  ;;  %v346_v44 = vld [vmem:[%s3948_s23 + $0x318] sm:$0xff]  ;;  %v459_v45 = vld [vmem:[%s3948_s23 + $0x6a0] sm:$0xff] }
 0x184   : > { %3430 = vmatprep.mubr.msk.f32.mxu0 %vm3891_vm0, %v3892_v1  ;;  %3769 = vmatprep.mubr.msk.f32.mxu1 %vm3891_vm0, %v3892_v1 }
 0x185   : > { %2390 = vst.msk [vmem:[%s4390_s29 + $0x130] sm:$0xff] %vm2351_vm5, %v1418_v46  ;;  %2503 = vst.msk [vmem:[%s4390_s29 + $0x4b8] sm:$0xff] %vm2351_vm5, %v1983_v49 }
 0x186   : > { %v1422_v53 = vpop.f32.mrb[78].mxu0  ;;  %v1987_v54 = vpop.f32.mrb[78].mxu1 }
 0x187   : > { %v1423_v55 = vadd.f32 %v4897_v29, %v1422_v53  ;;  %v3273_v56 = vpop.f32.mrb[79].mxu0  ;;  %3431 = vmatmul.mubr.msk.f32.gmra.mrb[184].mxu0 %vm481_vm4, %v339_v51  ;;  %v1988_v57 = vadd.f32 %v4897_v29, %v1987_v54  ;;  %v3612_v58 = vpop.f32.mrb[79].mxu1  ;;  %3770 = vmatmul.mubr.msk.f32.gmra.mrb[184].mxu1 %vm481_vm4, %v452_v52  ;;  %v347_v53 = vld [vmem:[%s3948_s23 + $0x320] sm:$0xff]  ;;  %v460_v54 = vld [vmem:[%s3948_s23 + $0x6a8] sm:$0xff] }
 0x188   : > { %3433 = vmatprep.mubr.msk.f32.mxu0 %vm3891_vm0, %v3892_v1  ;;  %3772 = vmatprep.mubr.msk.f32.mxu1 %vm3891_vm0, %v3892_v1 }
 0x189   : > { %2391 = vst.msk [vmem:[%s4390_s29 + $0x138] sm:$0xff] %vm2351_vm5, %v1423_v55  ;;  %2504 = vst.msk [vmem:[%s4390_s29 + $0x4c0] sm:$0xff] %vm2351_vm5, %v1988_v57 }
 0x18a   : > { %v1427_v61 = vpop.f32.mrb[80].mxu0  ;;  %v1992_v62 = vpop.f32.mrb[80].mxu1 }
 0x18b   : > { %v1428_v63 = vadd.f32 %v4897_v29, %v1427_v61  ;;  %v3276_v0 = vpop.f32.mrb[81].mxu0  ;;  %3434 = vmatmul.mubr.msk.f32.gmra.mrb[186].mxu0 %vm481_vm4, %v340_v59  ;;  %v1993_v2 = vadd.f32 %v4897_v29, %v1992_v62  ;;  %v3615_v3 = vpop.f32.mrb[81].mxu1  ;;  %3773 = vmatmul.mubr.msk.f32.gmra.mrb[186].mxu1 %vm481_vm4, %v453_v60  ;;  %v348_v61 = vld [vmem:[%s3948_s23 + $0x328] sm:$0xff]  ;;  %v461_v62 = vld [vmem:[%s3948_s23 + $0x6b0] sm:$0xff] }
 0x18c   : > { %3436 = vmatprep.mubr.msk.f32.mxu0 %vm3891_vm0, %v3892_v1  ;;  %3775 = vmatprep.mubr.msk.f32.mxu1 %vm3891_vm0, %v3892_v1 }
 0x18d   : > { %2392 = vst.msk [vmem:[%s4390_s29 + $0x140] sm:$0xff] %vm2351_vm5, %v1428_v63  ;;  %2505 = vst.msk [vmem:[%s4390_s29 + $0x4c8] sm:$0xff] %vm2351_vm5, %v1993_v2 }
 0x18e   : > { %v1432_v6 = vpop.f32.mrb[82].mxu0  ;;  %v1997_v7 = vpop.f32.mrb[82].mxu1 }
 0x18f   : > { %v1433_v8 = vadd.f32 %v4897_v29, %v1432_v6  ;;  %v3279_v9 = vpop.f32.mrb[83].mxu0  ;;  %3437 = vmatmul.mubr.msk.f32.gmra.mrb[188].mxu0 %vm481_vm4, %v341_v4  ;;  %v1998_v10 = vadd.f32 %v4897_v29, %v1997_v7  ;;  %v3618_v11 = vpop.f32.mrb[83].mxu1  ;;  %3776 = vmatmul.mubr.msk.f32.gmra.mrb[188].mxu1 %vm481_vm4, %v454_v5  ;;  %v349_v6 = vld [vmem:[%s3948_s23 + $0x330] sm:$0xff]  ;;  %v462_v7 = vld [vmem:[%s3948_s23 + $0x6b8] sm:$0xff] }
 0x190   : > { %3439 = vmatprep.mubr.msk.f32.mxu0 %vm3891_vm0, %v3892_v1  ;;  %3778 = vmatprep.mubr.msk.f32.mxu1 %vm3891_vm0, %v3892_v1 }
 0x191   : > { %2393 = vst.msk [vmem:[%s4390_s29 + $0x148] sm:$0xff] %vm2351_vm5, %v1433_v8  ;;  %2506 = vst.msk [vmem:[%s4390_s29 + $0x4d0] sm:$0xff] %vm2351_vm5, %v1998_v10 }
 0x192   : > { %v1437_v14 = vpop.f32.mrb[84].mxu0  ;;  %v2002_v15 = vpop.f32.mrb[84].mxu1 }
 0x193   : > { %v1438_v16 = vadd.f32 %v4897_v29, %v1437_v14  ;;  %v3282_v17 = vpop.f32.mrb[85].mxu0  ;;  %3440 = vmatmul.mubr.msk.f32.gmra.mrb[190].mxu0 %vm481_vm4, %v342_v12  ;;  %v2003_v18 = vadd.f32 %v4897_v29, %v2002_v15  ;;  %v3621_v19 = vpop.f32.mrb[85].mxu1  ;;  %3779 = vmatmul.mubr.msk.f32.gmra.mrb[190].mxu1 %vm481_vm4, %v455_v13  ;;  %v350_v14 = vld [vmem:[%s3948_s23 + $0x338] sm:$0xff]  ;;  %v463_v15 = vld [vmem:[%s3948_s23 + $0x6c0] sm:$0xff] }
 0x194   : > { %3442 = vmatprep.mubr.msk.f32.mxu0 %vm3891_vm0, %v3892_v1  ;;  %3781 = vmatprep.mubr.msk.f32.mxu1 %vm3891_vm0, %v3892_v1 }
 0x195   : > { %2394 = vst.msk [vmem:[%s4390_s29 + $0x150] sm:$0xff] %vm2351_vm5, %v1438_v16  ;;  %2507 = vst.msk [vmem:[%s4390_s29 + $0x4d8] sm:$0xff] %vm2351_vm5, %v2003_v18 }
 0x196   : > { %v1442_v22 = vpop.f32.mrb[86].mxu0  ;;  %v2007_v23 = vpop.f32.mrb[86].mxu1 }
 0x197   : > { %v1443_v24 = vadd.f32 %v4897_v29, %v1442_v22  ;;  %v3285_v25 = vpop.f32.mrb[87].mxu0  ;;  %3443 = vmatmul.mubr.msk.f32.gmra.mrb[192].mxu0 %vm481_vm4, %v343_v20  ;;  %v2008_v26 = vadd.f32 %v4897_v29, %v2007_v23  ;;  %v3624_v27 = vpop.f32.mrb[87].mxu1  ;;  %3782 = vmatmul.mubr.msk.f32.gmra.mrb[192].mxu1 %vm481_vm4, %v456_v21  ;;  %v351_v22 = vld [vmem:[%s3948_s23 + $0x340] sm:$0xff]  ;;  %v464_v23 = vld [vmem:[%s3948_s23 + $0x6c8] sm:$0xff] }
 0x198   : > { %3445 = vmatprep.mubr.msk.f32.mxu0 %vm3891_vm0, %v3892_v1  ;;  %3784 = vmatprep.mubr.msk.f32.mxu1 %vm3891_vm0, %v3892_v1 }
 0x199   : > { %2395 = vst.msk [vmem:[%s4390_s29 + $0x158] sm:$0xff] %vm2351_vm5, %v1443_v24  ;;  %2508 = vst.msk [vmem:[%s4390_s29 + $0x4e0] sm:$0xff] %vm2351_vm5, %v2008_v26 }
 0x19a   : > { %v1447_v30 = vpop.f32.mrb[88].mxu0  ;;  %v2012_v31 = vpop.f32.mrb[88].mxu1 }
 0x19b   : > { %v1448_v32 = vadd.f32 %v4897_v29, %v1447_v30  ;;  %v3288_v33 = vpop.f32.mrb[89].mxu0  ;;  %3446 = vmatmul.mubr.msk.f32.gmra.mrb[194].mxu0 %vm481_vm4, %v344_v48  ;;  %v2013_v34 = vadd.f32 %v4897_v29, %v2012_v31  ;;  %v3627_v35 = vpop.f32.mrb[89].mxu1  ;;  %3785 = vmatmul.mubr.msk.f32.gmra.mrb[194].mxu1 %vm481_vm4, %v457_v28  ;;  %v352_v30 = vld [vmem:[%s3948_s23 + $0x348] sm:$0xff]  ;;  %v465_v31 = vld [vmem:[%s3948_s23 + $0x6d0] sm:$0xff] }
 0x19c   : > { %3448 = vmatprep.mubr.msk.f32.mxu0 %vm3891_vm0, %v3892_v1  ;;  %3787 = vmatprep.mubr.msk.f32.mxu1 %vm3891_vm0, %v3892_v1 }
 0x19d   : > { %2396 = vst.msk [vmem:[%s4390_s29 + $0x160] sm:$0xff] %vm2351_vm5, %v1448_v32  ;;  %2509 = vst.msk [vmem:[%s4390_s29 + $0x4e8] sm:$0xff] %vm2351_vm5, %v2013_v34 }
 0x19e   : > { %v1452_v38 = vpop.f32.mrb[90].mxu0  ;;  %v2017_v39 = vpop.f32.mrb[90].mxu1 }
 0x19f   : > { %v1453_v40 = vadd.f32 %v4897_v29, %v1452_v38  ;;  %v3291_v41 = vpop.f32.mrb[91].mxu0  ;;  %3449 = vmatmul.mubr.msk.f32.gmra.mrb[196].mxu0 %vm481_vm4, %v345_v36  ;;  %v2018_v42 = vadd.f32 %v4897_v29, %v2017_v39  ;;  %v3630_v43 = vpop.f32.mrb[91].mxu1  ;;  %3788 = vmatmul.mubr.msk.f32.gmra.mrb[196].mxu1 %vm481_vm4, %v458_v37  ;;  %v353_v38 = vld [vmem:[%s3948_s23 + $0x350] sm:$0xff]  ;;  %v466_v39 = vld [vmem:[%s3948_s23 + $0x6d8] sm:$0xff] }
 0x1a0   : > { %3451 = vmatprep.mubr.msk.f32.mxu0 %vm3891_vm0, %v3892_v1  ;;  %3790 = vmatprep.mubr.msk.f32.mxu1 %vm3891_vm0, %v3892_v1 }
 0x1a1   : > { %2397 = vst.msk [vmem:[%s4390_s29 + $0x168] sm:$0xff] %vm2351_vm5, %v1453_v40  ;;  %2510 = vst.msk [vmem:[%s4390_s29 + $0x4f0] sm:$0xff] %vm2351_vm5, %v2018_v42 }
 0x1a2   : > { %v1457_v46 = vpop.f32.mrb[92].mxu0  ;;  %v2022_v47 = vpop.f32.mrb[92].mxu1 }
 0x1a3   : > { %v1458_v49 = vadd.f32 %v4897_v29, %v1457_v46  ;;  %v3294_v50 = vpop.f32.mrb[93].mxu0  ;;  %3452 = vmatmul.mubr.msk.f32.gmra.mrb[198].mxu0 %vm481_vm4, %v346_v44  ;;  %v2023_v51 = vadd.f32 %v4897_v29, %v2022_v47  ;;  %v3633_v52 = vpop.f32.mrb[93].mxu1  ;;  %3791 = vmatmul.mubr.msk.f32.gmra.mrb[198].mxu1 %vm481_vm4, %v459_v45  ;;  %v354_v46 = vld [vmem:[%s3948_s23 + $0x358] sm:$0xff]  ;;  %v467_v47 = vld [vmem:[%s3948_s23 + $0x6e0] sm:$0xff] }
 0x1a4   : > { %3454 = vmatprep.mubr.msk.f32.mxu0 %vm3891_vm0, %v3892_v1  ;;  %3793 = vmatprep.mubr.msk.f32.mxu1 %vm3891_vm0, %v3892_v1 }
 0x1a5   : > { %2398 = vst.msk [vmem:[%s4390_s29 + $0x170] sm:$0xff] %vm2351_vm5, %v1458_v49  ;;  %2511 = vst.msk [vmem:[%s4390_s29 + $0x4f8] sm:$0xff] %vm2351_vm5, %v2023_v51 }
 0x1a6   : > { %v1462_v55 = vpop.f32.mrb[94].mxu0  ;;  %v2027_v56 = vpop.f32.mrb[94].mxu1 }
 0x1a7   : > { %v1463_v57 = vadd.f32 %v4897_v29, %v1462_v55  ;;  %v3297_v58 = vpop.f32.mrb[95].mxu0  ;;  %3455 = vmatmul.mubr.msk.f32.gmra.mrb[200].mxu0 %vm481_vm4, %v347_v53  ;;  %v2028_v59 = vadd.f32 %v4897_v29, %v2027_v56  ;;  %v3636_v60 = vpop.f32.mrb[95].mxu1  ;;  %3794 = vmatmul.mubr.msk.f32.gmra.mrb[200].mxu1 %vm481_vm4, %v460_v54  ;;  %v355_v55 = vld [vmem:[%s3948_s23 + $0x360] sm:$0xff]  ;;  %v468_v56 = vld [vmem:[%s3948_s23 + $0x6e8] sm:$0xff] }
 0x1a8   : > { %3457 = vmatprep.mubr.msk.f32.mxu0 %vm3891_vm0, %v3892_v1  ;;  %3796 = vmatprep.mubr.msk.f32.mxu1 %vm3891_vm0, %v3892_v1 }
 0x1a9   : > { %2399 = vst.msk [vmem:[%s4390_s29 + $0x178] sm:$0xff] %vm2351_vm5, %v1463_v57  ;;  %2512 = vst.msk [vmem:[%s4390_s29 + $0x500] sm:$0xff] %vm2351_vm5, %v2028_v59 }
 0x1aa   : > { %v1467_v63 = vpop.f32.mrb[96].mxu0  ;;  %v2032_v0 = vpop.f32.mrb[96].mxu1 }
 0x1ab   : > { %v1468_v2 = vadd.f32 %v4897_v29, %v1467_v63  ;;  %v3300_v3 = vpop.f32.mrb[97].mxu0  ;;  %3458 = vmatmul.mubr.msk.f32.gmra.mrb[202].mxu0 %vm481_vm4, %v348_v61  ;;  %v2033_v4 = vadd.f32 %v4897_v29, %v2032_v0  ;;  %v3639_v5 = vpop.f32.mrb[97].mxu1  ;;  %3797 = vmatmul.mubr.msk.f32.gmra.mrb[202].mxu1 %vm481_vm4, %v461_v62  ;;  %v356_v63 = vld [vmem:[%s3948_s23 + $0x368] sm:$0xff]  ;;  %v469_v0 = vld [vmem:[%s3948_s23 + $0x6f0] sm:$0xff] }
 0x1ac   : > { %3460 = vmatprep.mubr.msk.f32.mxu0 %vm3891_vm0, %v3892_v1  ;;  %3799 = vmatprep.mubr.msk.f32.mxu1 %vm3891_vm0, %v3892_v1 }
 0x1ad   : > { %2400 = vst.msk [vmem:[%s4390_s29 + $0x180] sm:$0xff] %vm2351_vm5, %v1468_v2  ;;  %2513 = vst.msk [vmem:[%s4390_s29 + $0x508] sm:$0xff] %vm2351_vm5, %v2033_v4 }
 0x1ae   : > { %v1472_v8 = vpop.f32.mrb[98].mxu0  ;;  %v2037_v9 = vpop.f32.mrb[98].mxu1 }
 0x1af   : > { %v1473_v10 = vadd.f32 %v4897_v29, %v1472_v8  ;;  %v3303_v11 = vpop.f32.mrb[99].mxu0  ;;  %3461 = vmatmul.mubr.msk.f32.gmra.mrb[204].mxu0 %vm481_vm4, %v349_v6  ;;  %v2038_v12 = vadd.f32 %v4897_v29, %v2037_v9  ;;  %v3642_v13 = vpop.f32.mrb[99].mxu1  ;;  %3800 = vmatmul.mubr.msk.f32.gmra.mrb[204].mxu1 %vm481_vm4, %v462_v7  ;;  %v357_v8 = vld [vmem:[%s3948_s23 + $0x370] sm:$0xff]  ;;  %v470_v9 = vld [vmem:[%s3948_s23 + $0x6f8] sm:$0xff] }
 0x1b0   : > { %3463 = vmatprep.mubr.msk.f32.mxu0 %vm3891_vm0, %v3892_v1  ;;  %3802 = vmatprep.mubr.msk.f32.mxu1 %vm3891_vm0, %v3892_v1 }
 0x1b1   : > { %2401 = vst.msk [vmem:[%s4390_s29 + $0x188] sm:$0xff] %vm2351_vm5, %v1473_v10  ;;  %2514 = vst.msk [vmem:[%s4390_s29 + $0x510] sm:$0xff] %vm2351_vm5, %v2038_v12 }
 0x1b2   : > { %v1477_v16 = vpop.f32.mrb[100].mxu0  ;;  %v2042_v17 = vpop.f32.mrb[100].mxu1 }
 0x1b3   : > { %v1478_v18 = vadd.f32 %v4897_v29, %v1477_v16  ;;  %v3306_v19 = vpop.f32.mrb[101].mxu0  ;;  %3464 = vmatmul.mubr.msk.f32.gmra.mrb[206].mxu0 %vm481_vm4, %v350_v14  ;;  %v2043_v20 = vadd.f32 %v4897_v29, %v2042_v17  ;;  %v3645_v21 = vpop.f32.mrb[101].mxu1  ;;  %3803 = vmatmul.mubr.msk.f32.gmra.mrb[206].mxu1 %vm481_vm4, %v463_v15  ;;  %v358_v16 = vld [vmem:[%s3948_s23 + $0x378] sm:$0xff]  ;;  %v471_v17 = vld [vmem:[%s3948_s23 + $0x700] sm:$0xff] }
 0x1b4   : > { %3466 = vmatprep.mubr.msk.f32.mxu0 %vm3891_vm0, %v3892_v1  ;;  %3805 = vmatprep.mubr.msk.f32.mxu1 %vm3891_vm0, %v3892_v1 }
 0x1b5   : > { %2402 = vst.msk [vmem:[%s4390_s29 + $0x190] sm:$0xff] %vm2351_vm5, %v1478_v18  ;;  %2515 = vst.msk [vmem:[%s4390_s29 + $0x518] sm:$0xff] %vm2351_vm5, %v2043_v20 }
 0x1b6   : > { %v1482_v24 = vpop.f32.mrb[102].mxu0  ;;  %v2047_v25 = vpop.f32.mrb[102].mxu1 }
 0x1b7   : > { %v1483_v26 = vadd.f32 %v4897_v29, %v1482_v24  ;;  %v3309_v27 = vpop.f32.mrb[103].mxu0  ;;  %3467 = vmatmul.mubr.msk.f32.gmra.mrb[208].mxu0 %vm481_vm4, %v351_v22  ;;  %v2048_v48 = vadd.f32 %v4897_v29, %v2047_v25  ;;  %v3648_v28 = vpop.f32.mrb[103].mxu1  ;;  %3806 = vmatmul.mubr.msk.f32.gmra.mrb[208].mxu1 %vm481_vm4, %v464_v23  ;;  %v359_v24 = vld [vmem:[%s3948_s23 + $0x380] sm:$0xff] }
 0x1b8   : > { %3469 = vmatprep.mubr.msk.f32.mxu0 %vm3891_vm0, %v3892_v1  ;;  %3808 = vmatprep.mubr.msk.f32.mxu1 %vm3891_vm0, %v3892_v1 }
 0x1b9   : > { %2403 = vst.msk [vmem:[%s4390_s29 + $0x198] sm:$0xff] %vm2351_vm5, %v1483_v26  ;;  %2516 = vst.msk [vmem:[%s4390_s29 + $0x520] sm:$0xff] %vm2351_vm5, %v2048_v48 }
 0x1ba   : > { %v1487_v32 = vpop.f32.mrb[104].mxu0  ;;  %v2052_v33 = vpop.f32.mrb[104].mxu1 }
 0x1bb   : > { %v1488_v34 = vadd.f32 %v4897_v29, %v1487_v32  ;;  %v3312_v35 = vpop.f32.mrb[105].mxu0  ;;  %3470 = vmatmul.mubr.msk.f32.gmra.mrb[210].mxu0 %vm481_vm4, %v352_v30  ;;  %v2053_v36 = vadd.f32 %v4897_v29, %v2052_v33  ;;  %v3651_v37 = vpop.f32.mrb[105].mxu1  ;;  %3809 = vmatmul.mubr.msk.f32.gmra.mrb[210].mxu1 %vm481_vm4, %v465_v31 }
 0x1bc   : > { %3472 = vmatprep.mubr.msk.f32.mxu0 %vm3891_vm0, %v3892_v1  ;;  %3811 = vmatprep.mubr.msk.f32.mxu1 %vm3891_vm0, %v3892_v1 }
 0x1bd   : > { %2404 = vst.msk [vmem:[%s4390_s29 + $0x1a0] sm:$0xff] %vm2351_vm5, %v1488_v34  ;;  %2517 = vst.msk [vmem:[%s4390_s29 + $0x528] sm:$0xff] %vm2351_vm5, %v2053_v36 }
 0x1be   : > { %v1492_v40 = vpop.f32.mrb[106].mxu0  ;;  %v2057_v41 = vpop.f32.mrb[106].mxu1 }
 0x1bf   : > { %v1493_v42 = vadd.f32 %v4897_v29, %v1492_v40  ;;  %v3315_v43 = vpop.f32.mrb[107].mxu0  ;;  %3473 = vmatmul.mubr.msk.f32.gmra.mrb[212].mxu0 %vm481_vm4, %v353_v38  ;;  %v2058_v44 = vadd.f32 %v4897_v29, %v2057_v41  ;;  %v3654_v45 = vpop.f32.mrb[107].mxu1  ;;  %3812 = vmatmul.mubr.msk.f32.gmra.mrb[212].mxu1 %vm481_vm4, %v466_v39 }
 0x1c0   : > { %3475 = vmatprep.mubr.msk.f32.mxu0 %vm3891_vm0, %v3892_v1  ;;  %3814 = vmatprep.mubr.msk.f32.mxu1 %vm3891_vm0, %v3892_v1 }
 0x1c1   : > { %2405 = vst.msk [vmem:[%s4390_s29 + $0x1a8] sm:$0xff] %vm2351_vm5, %v1493_v42  ;;  %2518 = vst.msk [vmem:[%s4390_s29 + $0x530] sm:$0xff] %vm2351_vm5, %v2058_v44 }
 0x1c2   : > { %v1497_v49 = vpop.f32.mrb[108].mxu0  ;;  %v2062_v50 = vpop.f32.mrb[108].mxu1 }
 0x1c3   : > { %v1498_v51 = vadd.f32 %v4897_v29, %v1497_v49  ;;  %v3318_v52 = vpop.f32.mrb[109].mxu0  ;;  %3476 = vmatmul.mubr.msk.f32.gmra.mrb[214].mxu0 %vm481_vm4, %v354_v46  ;;  %v2063_v53 = vadd.f32 %v4897_v29, %v2062_v50  ;;  %v3657_v54 = vpop.f32.mrb[109].mxu1  ;;  %3815 = vmatmul.mubr.msk.f32.gmra.mrb[214].mxu1 %vm481_vm4, %v467_v47 }
 0x1c4   : > { %3478 = vmatprep.mubr.msk.f32.mxu0 %vm3891_vm0, %v3892_v1  ;;  %3817 = vmatprep.mubr.msk.f32.mxu1 %vm3891_vm0, %v3892_v1 }
 0x1c5   : > { %2406 = vst.msk [vmem:[%s4390_s29 + $0x1b0] sm:$0xff] %vm2351_vm5, %v1498_v51  ;;  %2519 = vst.msk [vmem:[%s4390_s29 + $0x538] sm:$0xff] %vm2351_vm5, %v2063_v53 }
 0x1c6   : > { %v1502_v57 = vpop.f32.mrb[110].mxu0  ;;  %v2067_v58 = vpop.f32.mrb[110].mxu1 }
 0x1c7   : > { %v1503_v59 = vadd.f32 %v4897_v29, %v1502_v57  ;;  %v3321_v60 = vpop.f32.mrb[111].mxu0  ;;  %3479 = vmatmul.mubr.msk.f32.gmra.mrb[216].mxu0 %vm481_vm4, %v355_v55  ;;  %v2068_v61 = vadd.f32 %v4897_v29, %v2067_v58  ;;  %v3660_v62 = vpop.f32.mrb[111].mxu1  ;;  %3818 = vmatmul.mubr.msk.f32.gmra.mrb[216].mxu1 %vm481_vm4, %v468_v56 }
 0x1c8   : > { %3481 = vmatprep.mubr.msk.f32.mxu0 %vm3891_vm0, %v3892_v1  ;;  %3820 = vmatprep.mubr.msk.f32.mxu1 %vm3891_vm0, %v3892_v1 }
 0x1c9   : > { %2407 = vst.msk [vmem:[%s4390_s29 + $0x1b8] sm:$0xff] %vm2351_vm5, %v1503_v59  ;;  %2520 = vst.msk [vmem:[%s4390_s29 + $0x540] sm:$0xff] %vm2351_vm5, %v2068_v61 }
 0x1ca   : > { %v1507_v2 = vpop.f32.mrb[112].mxu0  ;;  %v2072_v3 = vpop.f32.mrb[112].mxu1 }
 0x1cb   : > { %v1508_v4 = vadd.f32 %v4897_v29, %v1507_v2  ;;  %v3324_v5 = vpop.f32.mrb[113].mxu0  ;;  %3482 = vmatmul.mubr.msk.f32.gmra.mrb[218].mxu0 %vm481_vm4, %v356_v63  ;;  %v2073_v6 = vadd.f32 %v4897_v29, %v2072_v3  ;;  %v3663_v7 = vpop.f32.mrb[113].mxu1  ;;  %3821 = vmatmul.mubr.msk.f32.gmra.mrb[218].mxu1 %vm481_vm4, %v469_v0 }
 0x1cc   : > { %3484 = vmatprep.mubr.msk.f32.mxu0 %vm3891_vm0, %v3892_v1  ;;  %3823 = vmatprep.mubr.msk.f32.mxu1 %vm3891_vm0, %v3892_v1 }
 0x1cd   : > { %2408 = vst.msk [vmem:[%s4390_s29 + $0x1c0] sm:$0xff] %vm2351_vm5, %v1508_v4  ;;  %2521 = vst.msk [vmem:[%s4390_s29 + $0x548] sm:$0xff] %vm2351_vm5, %v2073_v6 }
 0x1ce   : > { %v1512_v10 = vpop.f32.mrb[114].mxu0  ;;  %v2077_v11 = vpop.f32.mrb[114].mxu1 }
 0x1cf   : > { %v1513_v12 = vadd.f32 %v4897_v29, %v1512_v10  ;;  %v3327_v13 = vpop.f32.mrb[115].mxu0  ;;  %3485 = vmatmul.mubr.msk.f32.gmra.mrb[220].mxu0 %vm481_vm4, %v357_v8  ;;  %v2078_v14 = vadd.f32 %v4897_v29, %v2077_v11  ;;  %v3666_v15 = vpop.f32.mrb[115].mxu1  ;;  %3824 = vmatmul.mubr.msk.f32.gmra.mrb[220].mxu1 %vm481_vm4, %v470_v9 }
 0x1d0   : > { %3487 = vmatprep.mubr.msk.f32.mxu0 %vm3891_vm0, %v3892_v1  ;;  %3826 = vmatprep.mubr.msk.f32.mxu1 %vm3891_vm0, %v3892_v1 }
 0x1d1   : > { %2409 = vst.msk [vmem:[%s4390_s29 + $0x1c8] sm:$0xff] %vm2351_vm5, %v1513_v12  ;;  %2522 = vst.msk [vmem:[%s4390_s29 + $0x550] sm:$0xff] %vm2351_vm5, %v2078_v14 }
 0x1d2   : > { %v1517_v18 = vpop.f32.mrb[116].mxu0  ;;  %v2082_v19 = vpop.f32.mrb[116].mxu1 }
 0x1d3   : > { %v1518_v20 = vadd.f32 %v4897_v29, %v1517_v18  ;;  %v3330_v21 = vpop.f32.mrb[117].mxu0  ;;  %3488 = vmatmul.mubr.msk.f32.gmra.mrb[222].mxu0 %vm481_vm4, %v358_v16  ;;  %v2083_v22 = vadd.f32 %v4897_v29, %v2082_v19  ;;  %v3669_v23 = vpop.f32.mrb[117].mxu1  ;;  %3827 = vmatmul.mubr.msk.f32.gmra.mrb[222].mxu1 %vm481_vm4, %v471_v17 }
 0x1d4   : > { %3490 = vmatprep.mubr.msk.f32.mxu0 %vm3891_vm0, %v3892_v1 }
 0x1d5   : > { %2410 = vst.msk [vmem:[%s4390_s29 + $0x1d0] sm:$0xff] %vm2351_vm5, %v1518_v20  ;;  %2523 = vst.msk [vmem:[%s4390_s29 + $0x558] sm:$0xff] %vm2351_vm5, %v2083_v22 }
 0x1d6   : > { %v1522_v25 = vpop.f32.mrb[118].mxu0  ;;  %v2087_v26 = vpop.f32.mrb[118].mxu1 }
 0x1d7   : > { %v1523_v27 = vadd.f32 %v4897_v29, %v1522_v25  ;;  %v3333_v48 = vpop.f32.mrb[119].mxu0  ;;  %3491 = vmatmul.mubr.msk.f32.gmra.mrb[224].mxu0 %vm481_vm4, %v359_v24  ;;  %v2088_v28 = vadd.f32 %v4897_v29, %v2087_v26  ;;  %v3672_v30 = vpop.f32.mrb[119].mxu1 }
 0x1d9   : > { %2411 = vst.msk [vmem:[%s4390_s29 + $0x1d8] sm:$0xff] %vm2351_vm5, %v1523_v27  ;;  %2524 = vst.msk [vmem:[%s4390_s29 + $0x560] sm:$0xff] %vm2351_vm5, %v2088_v28 }
 0x1da   : > { %v1527_v1 = vpop.f32.mrb[120].mxu0  ;;  %v2092_v31 = vpop.f32.mrb[120].mxu1 }
 0x1db   : > { %v1528_v32 = vadd.f32 %v4897_v29, %v1527_v1  ;;  %v3336_v33 = vpop.f32.mrb[121].mxu0  ;;  %v2093_v34 = vadd.f32 %v4897_v29, %v2092_v31  ;;  %v3675_v35 = vpop.f32.mrb[121].mxu1 }
 0x1dd   : > { %2412 = vst.msk [vmem:[%s4390_s29 + $0x1e0] sm:$0xff] %vm2351_vm5, %v1528_v32  ;;  %2525 = vst.msk [vmem:[%s4390_s29 + $0x568] sm:$0xff] %vm2351_vm5, %v2093_v34 }
 0x1de   : > { %v1532_v36 = vpop.f32.mrb[122].mxu0  ;;  %v2097_v37 = vpop.f32.mrb[122].mxu1 }
 0x1df   : > { %v1533_v38 = vadd.f32 %v4897_v29, %v1532_v36  ;;  %v3339_v39 = vpop.f32.mrb[123].mxu0  ;;  %v2098_v40 = vadd.f32 %v4897_v29, %v2097_v37  ;;  %v3678_v41 = vpop.f32.mrb[123].mxu1 }
 0x1e1   : > { %2413 = vst.msk [vmem:[%s4390_s29 + $0x1e8] sm:$0xff] %vm2351_vm5, %v1533_v38  ;;  %2526 = vst.msk [vmem:[%s4390_s29 + $0x570] sm:$0xff] %vm2351_vm5, %v2098_v40 }
 0x1e2   : > { %v1537_v42 = vpop.f32.mrb[124].mxu0  ;;  %v2102_v43 = vpop.f32.mrb[124].mxu1 }
 0x1e3   : > { %v1538_v44 = vadd.f32 %v4897_v29, %v1537_v42  ;;  %v3342_v45 = vpop.f32.mrb[125].mxu0  ;;  %v2103_v46 = vadd.f32 %v4897_v29, %v2102_v43  ;;  %v3681_v47 = vpop.f32.mrb[125].mxu1 }
 0x1e5   : > { %2414 = vst.msk [vmem:[%s4390_s29 + $0x1f0] sm:$0xff] %vm2351_vm5, %v1538_v44  ;;  %2527 = vst.msk [vmem:[%s4390_s29 + $0x578] sm:$0xff] %vm2351_vm5, %v2103_v46 }
 0x1e6   : > { %v1542_v49 = vpop.f32.mrb[126].mxu0  ;;  %v2107_v50 = vpop.f32.mrb[126].mxu1 }
 0x1e7   : > { %v1543_v51 = vadd.f32 %v4897_v29, %v1542_v49  ;;  %v3345_v52 = vpop.f32.mrb[127].mxu0  ;;  %v2108_v53 = vadd.f32 %v4897_v29, %v2107_v50  ;;  %v3684_v54 = vpop.f32.mrb[127].mxu1 }
 0x1e9   : > { %2415 = vst.msk [vmem:[%s4390_s29 + $0x1f8] sm:$0xff] %vm2351_vm5, %v1543_v51  ;;  %2528 = vst.msk [vmem:[%s4390_s29 + $0x580] sm:$0xff] %vm2351_vm5, %v2108_v53 }
 0x1ea   : > { %v1547_v55 = vpop.f32.mrb[128].mxu0  ;;  %v2112_v56 = vpop.f32.mrb[128].mxu1 }
 0x1eb   : > { %v1548_v57 = vadd.f32 %v4897_v29, %v1547_v55  ;;  %v3348_v58 = vpop.f32.mrb[129].mxu0  ;;  %v2113_v59 = vadd.f32 %v4897_v29, %v2112_v56  ;;  %v3687_v60 = vpop.f32.mrb[129].mxu1 }
 0x1ed   : > { %2416 = vst.msk [vmem:[%s4390_s29 + $0x200] sm:$0xff] %vm2351_vm5, %v1548_v57  ;;  %2529 = vst.msk [vmem:[%s4390_s29 + $0x588] sm:$0xff] %vm2351_vm5, %v2113_v59 }
 0x1ee   : > { %v1552_v61 = vpop.f32.mrb[130].mxu0  ;;  %v2117_v62 = vpop.f32.mrb[130].mxu1 }
 0x1ef   : > { %v1553_v63 = vadd.f32 %v4897_v29, %v1552_v61  ;;  %v3351_v0 = vpop.f32.mrb[131].mxu0  ;;  %v2118_v2 = vadd.f32 %v4897_v29, %v2117_v62  ;;  %v3690_v3 = vpop.f32.mrb[131].mxu1 }
 0x1f1   : > { %2417 = vst.msk [vmem:[%s4390_s29 + $0x208] sm:$0xff] %vm2351_vm5, %v1553_v63  ;;  %2530 = vst.msk [vmem:[%s4390_s29 + $0x590] sm:$0xff] %vm2351_vm5, %v2118_v2 }
 0x1f2   : > { %v1557_v4 = vpop.f32.mrb[132].mxu0  ;;  %v2122_v5 = vpop.f32.mrb[132].mxu1 }
 0x1f3   : > { %v1558_v6 = vadd.f32 %v4897_v29, %v1557_v4  ;;  %v3354_v7 = vpop.f32.mrb[133].mxu0  ;;  %v2123_v8 = vadd.f32 %v4897_v29, %v2122_v5  ;;  %v3693_v9 = vpop.f32.mrb[133].mxu1 }
 0x1f5   : > { %2418 = vst.msk [vmem:[%s4390_s29 + $0x210] sm:$0xff] %vm2351_vm5, %v1558_v6  ;;  %2531 = vst.msk [vmem:[%s4390_s29 + $0x598] sm:$0xff] %vm2351_vm5, %v2123_v8 }
 0x1f6   : > { %v1562_v10 = vpop.f32.mrb[134].mxu0  ;;  %v2127_v11 = vpop.f32.mrb[134].mxu1 }
 0x1f7   : > { %v1563_v12 = vadd.f32 %v4897_v29, %v1562_v10  ;;  %v3357_v13 = vpop.f32.mrb[135].mxu0  ;;  %v2128_v14 = vadd.f32 %v4897_v29, %v2127_v11  ;;  %v3696_v15 = vpop.f32.mrb[135].mxu1 }
 0x1f9   : > { %2419 = vst.msk [vmem:[%s4390_s29 + $0x218] sm:$0xff] %vm2351_vm5, %v1563_v12  ;;  %2532 = vst.msk [vmem:[%s4390_s29 + $0x5a0] sm:$0xff] %vm2351_vm5, %v2128_v14 }
 0x1fa   : > { %v1567_v16 = vpop.f32.mrb[136].mxu0  ;;  %v2132_v17 = vpop.f32.mrb[136].mxu1 }
 0x1fb   : > { %v1568_v18 = vadd.f32 %v4897_v29, %v1567_v16  ;;  %v3360_v19 = vpop.f32.mrb[137].mxu0  ;;  %v2133_v20 = vadd.f32 %v4897_v29, %v2132_v17  ;;  %v3699_v21 = vpop.f32.mrb[137].mxu1 }
 0x1fd   : > { %2420 = vst.msk [vmem:[%s4390_s29 + $0x220] sm:$0xff] %vm2351_vm5, %v1568_v18  ;;  %2533 = vst.msk [vmem:[%s4390_s29 + $0x5a8] sm:$0xff] %vm2351_vm5, %v2133_v20 }
 0x1fe   : > { %v1572_v22 = vpop.f32.mrb[138].mxu0  ;;  %v2137_v23 = vpop.f32.mrb[138].mxu1 }
 0x1ff   : > { %v1573_v24 = vadd.f32 %v4897_v29, %v1572_v22  ;;  %v3363_v25 = vpop.f32.mrb[139].mxu0  ;;  %v2138_v26 = vadd.f32 %v4897_v29, %v2137_v23  ;;  %v3702_v27 = vpop.f32.mrb[139].mxu1 }
 0x201   : > { %2421 = vst.msk [vmem:[%s4390_s29 + $0x228] sm:$0xff] %vm2351_vm5, %v1573_v24  ;;  %2534 = vst.msk [vmem:[%s4390_s29 + $0x5b0] sm:$0xff] %vm2351_vm5, %v2138_v26 }
 0x202   : > { %v1577_v48 = vpop.f32.mrb[140].mxu0  ;;  %v2142_v28 = vpop.f32.mrb[140].mxu1 }
 0x203   : > { %v1578_v30 = vadd.f32 %v4897_v29, %v1577_v48  ;;  %v3366_v1 = vpop.f32.mrb[141].mxu0  ;;  %v2143_v31 = vadd.f32 %v4897_v29, %v2142_v28  ;;  %v3705_v32 = vpop.f32.mrb[141].mxu1 }
 0x205   : > { %2422 = vst.msk [vmem:[%s4390_s29 + $0x230] sm:$0xff] %vm2351_vm5, %v1578_v30  ;;  %2535 = vst.msk [vmem:[%s4390_s29 + $0x5b8] sm:$0xff] %vm2351_vm5, %v2143_v31 }
 0x206   : > { %v1582_v33 = vpop.f32.mrb[142].mxu0  ;;  %v2147_v34 = vpop.f32.mrb[142].mxu1 }
 0x207   : > { %v1583_v35 = vadd.f32 %v4897_v29, %v1582_v33  ;;  %v3369_v36 = vpop.f32.mrb[143].mxu0  ;;  %v2148_v37 = vadd.f32 %v4897_v29, %v2147_v34  ;;  %v3708_v38 = vpop.f32.mrb[143].mxu1 }
 0x209   : > { %2423 = vst.msk [vmem:[%s4390_s29 + $0x238] sm:$0xff] %vm2351_vm5, %v1583_v35  ;;  %2536 = vst.msk [vmem:[%s4390_s29 + $0x5c0] sm:$0xff] %vm2351_vm5, %v2148_v37 }
 0x20a   : > { %v1587_v39 = vpop.f32.mrb[144].mxu0  ;;  %v2152_v40 = vpop.f32.mrb[144].mxu1 }
 0x20b   : > { %v1588_v41 = vadd.f32 %v4897_v29, %v1587_v39  ;;  %v3372_v42 = vpop.f32.mrb[145].mxu0  ;;  %v2153_v43 = vadd.f32 %v4897_v29, %v2152_v40  ;;  %v3711_v44 = vpop.f32.mrb[145].mxu1 }
 0x20c   : > { %v5364_v44 = vld [vmem:[%s4372_s26] ss:$0 sm:$0xff] }
 0x20d   : > { %2424 = vst.msk [vmem:[%s4390_s29 + $0x240] sm:$0xff] %vm2351_vm5, %v1588_v41  ;;  %2537 = vst.msk [vmem:[%s4390_s29 + $0x5c8] sm:$0xff] %vm2351_vm5, %v2153_v43 }
 0x20e   : > { %v1592_v45 = vpop.f32.mrb[146].mxu0  ;;  %v2157_v46 = vpop.f32.mrb[146].mxu1 }
 0x20f   : > { %v1593_v47 = vadd.f32 %v4897_v29, %v1592_v45  ;;  %v3375_v49 = vpop.f32.mrb[147].mxu0  ;;  %v2158_v50 = vadd.f32 %v4897_v29, %v2157_v46  ;;  %v3714_v51 = vpop.f32.mrb[147].mxu1 }
 0x211   : > { %2425 = vst.msk [vmem:[%s4390_s29 + $0x248] sm:$0xff] %vm2351_vm5, %v1593_v47  ;;  %2538 = vst.msk [vmem:[%s4390_s29 + $0x5d0] sm:$0xff] %vm2351_vm5, %v2158_v50 }
 0x212   : > { %v1597_v52 = vpop.f32.mrb[148].mxu0  ;;  %v2162_v53 = vpop.f32.mrb[148].mxu1 }
 0x213   : > { %v1598_v54 = vadd.f32 %v4897_v29, %v1597_v52  ;;  %v3378_v55 = vpop.f32.mrb[149].mxu0  ;;  %v2163_v56 = vadd.f32 %v4897_v29, %v2162_v53  ;;  %v3717_v57 = vpop.f32.mrb[149].mxu1 }
 0x215   : > { %2426 = vst.msk [vmem:[%s4390_s29 + $0x250] sm:$0xff] %vm2351_vm5, %v1598_v54  ;;  %2539 = vst.msk [vmem:[%s4390_s29 + $0x5d8] sm:$0xff] %vm2351_vm5, %v2163_v56 }
 0x216   : > { %v1602_v58 = vpop.f32.mrb[150].mxu0  ;;  %v2167_v59 = vpop.f32.mrb[150].mxu1 }
 0x217   : > { %v1603_v60 = vadd.f32 %v4897_v29, %v1602_v58  ;;  %v3381_v61 = vpop.f32.mrb[151].mxu0  ;;  %v2168_v62 = vadd.f32 %v4897_v29, %v2167_v59  ;;  %v3720_v63 = vpop.f32.mrb[151].mxu1 }
 0x219   : > { %2427 = vst.msk [vmem:[%s4390_s29 + $0x258] sm:$0xff] %vm2351_vm5, %v1603_v60  ;;  %2540 = vst.msk [vmem:[%s4390_s29 + $0x5e0] sm:$0xff] %vm2351_vm5, %v2168_v62 }
 0x21a   : > { %v1607_v0 = vpop.f32.mrb[152].mxu0  ;;  %v2172_v2 = vpop.f32.mrb[152].mxu1 }
 0x21b   : > { %v1608_v3 = vadd.f32 %v4897_v29, %v1607_v0  ;;  %v3384_v4 = vpop.f32.mrb[153].mxu0  ;;  %v2173_v5 = vadd.f32 %v4897_v29, %v2172_v2  ;;  %v3723_v6 = vpop.f32.mrb[153].mxu1 }
 0x21d   : > { %2428 = vst.msk [vmem:[%s4390_s29 + $0x260] sm:$0xff] %vm2351_vm5, %v1608_v3  ;;  %2541 = vst.msk [vmem:[%s4390_s29 + $0x5e8] sm:$0xff] %vm2351_vm5, %v2173_v5 }
 0x21e   : > { %v1612_v7 = vpop.f32.mrb[154].mxu0  ;;  %v2177_v8 = vpop.f32.mrb[154].mxu1 }
 0x21f   : > { %v1613_v9 = vadd.f32 %v4897_v29, %v1612_v7  ;;  %v3387_v10 = vpop.f32.mrb[155].mxu0  ;;  %v2178_v11 = vadd.f32 %v4897_v29, %v2177_v8  ;;  %v3726_v12 = vpop.f32.mrb[155].mxu1 }
 0x221   : > { %2429 = vst.msk [vmem:[%s4390_s29 + $0x268] sm:$0xff] %vm2351_vm5, %v1613_v9  ;;  %2542 = vst.msk [vmem:[%s4390_s29 + $0x5f0] sm:$0xff] %vm2351_vm5, %v2178_v11 }
 0x222   : > { %v1617_v13 = vpop.f32.mrb[156].mxu0  ;;  %v2182_v14 = vpop.f32.mrb[156].mxu1 }
 0x223   : > { %v1618_v15 = vadd.f32 %v4897_v29, %v1617_v13  ;;  %v3390_v16 = vpop.f32.mrb[157].mxu0  ;;  %v2183_v17 = vadd.f32 %v4897_v29, %v2182_v14  ;;  %v3729_v18 = vpop.f32.mrb[157].mxu1 }
 0x225   : > { %2430 = vst.msk [vmem:[%s4390_s29 + $0x270] sm:$0xff] %vm2351_vm5, %v1618_v15  ;;  %2543 = vst.msk [vmem:[%s4390_s29 + $0x5f8] sm:$0xff] %vm2351_vm5, %v2183_v17 }
 0x226   : > { %v1622_v19 = vpop.f32.mrb[158].mxu0  ;;  %v2187_v20 = vpop.f32.mrb[158].mxu1 }
 0x227   : > { %v1623_v21 = vadd.f32 %v4897_v29, %v1622_v19  ;;  %v3393_v22 = vpop.f32.mrb[159].mxu0  ;;  %v2188_v23 = vadd.f32 %v4897_v29, %v2187_v20  ;;  %v3732_v24 = vpop.f32.mrb[159].mxu1 }
 0x229   : > { %2431 = vst.msk [vmem:[%s4390_s29 + $0x278] sm:$0xff] %vm2351_vm5, %v1623_v21  ;;  %2544 = vst.msk [vmem:[%s4390_s29 + $0x600] sm:$0xff] %vm2351_vm5, %v2188_v23 }
 0x22a   : > { %v1627_v25 = vpop.f32.mrb[160].mxu0  ;;  %v2192_v26 = vpop.f32.mrb[160].mxu1 }
 0x22b   : > { %v1628_v27 = vadd.f32 %v4897_v29, %v1627_v25  ;;  %v3396_v48 = vpop.f32.mrb[161].mxu0  ;;  %v2193_v28 = vadd.f32 %v4897_v29, %v2192_v26  ;;  %v3735_v30 = vpop.f32.mrb[161].mxu1 }
 0x22d   : > { %2432 = vst.msk [vmem:[%s4390_s29 + $0x280] sm:$0xff] %vm2351_vm5, %v1628_v27  ;;  %2545 = vst.msk [vmem:[%s4390_s29 + $0x608] sm:$0xff] %vm2351_vm5, %v2193_v28 }
 0x22e   : > { %v1632_v1 = vpop.f32.mrb[162].mxu0  ;;  %v2197_v31 = vpop.f32.mrb[162].mxu1 }
 0x22f   : > { %v1633_v32 = vadd.f32 %v4897_v29, %v1632_v1  ;;  %v3399_v33 = vpop.f32.mrb[163].mxu0  ;;  %v2198_v34 = vadd.f32 %v4897_v29, %v2197_v31  ;;  %v3738_v35 = vpop.f32.mrb[163].mxu1 }
 0x231   : > { %2433 = vst.msk [vmem:[%s4390_s29 + $0x288] sm:$0xff] %vm2351_vm5, %v1633_v32  ;;  %2546 = vst.msk [vmem:[%s4390_s29 + $0x610] sm:$0xff] %vm2351_vm5, %v2198_v34 }
 0x232   : > { %v1637_v36 = vpop.f32.mrb[164].mxu0  ;;  %v2202_v37 = vpop.f32.mrb[164].mxu1 }
 0x233   : > { %v1638_v38 = vadd.f32 %v4897_v29, %v1637_v36  ;;  %v3402_v39 = vpop.f32.mrb[165].mxu0  ;;  %v2203_v40 = vadd.f32 %v4897_v29, %v2202_v37  ;;  %v3741_v41 = vpop.f32.mrb[165].mxu1 }
 0x235   : > { %2434 = vst.msk [vmem:[%s4390_s29 + $0x290] sm:$0xff] %vm2351_vm5, %v1638_v38  ;;  %2547 = vst.msk [vmem:[%s4390_s29 + $0x618] sm:$0xff] %vm2351_vm5, %v2203_v40 }
 0x236   : > { %v1642_v42 = vpop.f32.mrb[166].mxu0  ;;  %v2207_v43 = vpop.f32.mrb[166].mxu1 }
 0x237   : > { %v1643_v45 = vadd.f32 %v5364_v44, %v1642_v42  ;;  %v3405_v46 = vpop.f32.mrb[167].mxu0  ;;  %v2208_v47 = vadd.f32 %v5364_v44, %v2207_v43  ;;  %v3744_v49 = vpop.f32.mrb[167].mxu1 }
 0x239   : > { %2435 = vst.msk [vmem:[%s4390_s29 + $0x298] sm:$0xff] %vm2351_vm5, %v1643_v45  ;;  %2548 = vst.msk [vmem:[%s4390_s29 + $0x620] sm:$0xff] %vm2351_vm5, %v2208_v47 }
 0x23a   : > { %v1647_v29 = vpop.f32.mrb[168].mxu0  ;;  %v2212_v50 = vpop.f32.mrb[168].mxu1 }
 0x23b   : > { %v1648_v51 = vadd.f32 %v5364_v44, %v1647_v29  ;;  %v3408_v52 = vpop.f32.mrb[169].mxu0  ;;  %v2213_v53 = vadd.f32 %v5364_v44, %v2212_v50  ;;  %v3747_v54 = vpop.f32.mrb[169].mxu1 }
 0x23d   : > { %2436 = vst.msk [vmem:[%s4390_s29 + $0x2a0] sm:$0xff] %vm2351_vm5, %v1648_v51  ;;  %2549 = vst.msk [vmem:[%s4390_s29 + $0x628] sm:$0xff] %vm2351_vm5, %v2213_v53 }
 0x23e   : > { %v1652_v55 = vpop.f32.mrb[170].mxu0  ;;  %v2217_v56 = vpop.f32.mrb[170].mxu1 }
 0x23f   : > { %v1653_v57 = vadd.f32 %v5364_v44, %v1652_v55  ;;  %v3411_v58 = vpop.f32.mrb[171].mxu0  ;;  %v2218_v59 = vadd.f32 %v5364_v44, %v2217_v56  ;;  %v3750_v60 = vpop.f32.mrb[171].mxu1 }
 0x241   : > { %2437 = vst.msk [vmem:[%s4390_s29 + $0x2a8] sm:$0xff] %vm2351_vm5, %v1653_v57  ;;  %2550 = vst.msk [vmem:[%s4390_s29 + $0x630] sm:$0xff] %vm2351_vm5, %v2218_v59 }
 0x242   : > { %v1657_v61 = vpop.f32.mrb[172].mxu0  ;;  %v2222_v62 = vpop.f32.mrb[172].mxu1 }
 0x243   : > { %v1658_v63 = vadd.f32 %v5364_v44, %v1657_v61  ;;  %v3414_v0 = vpop.f32.mrb[173].mxu0  ;;  %v2223_v2 = vadd.f32 %v5364_v44, %v2222_v62  ;;  %v3753_v3 = vpop.f32.mrb[173].mxu1 }
 0x245   : > { %2438 = vst.msk [vmem:[%s4390_s29 + $0x2b0] sm:$0xff] %vm2351_vm5, %v1658_v63  ;;  %2551 = vst.msk [vmem:[%s4390_s29 + $0x638] sm:$0xff] %vm2351_vm5, %v2223_v2 }
 0x246   : > { %v1662_v4 = vpop.f32.mrb[174].mxu0  ;;  %v2227_v5 = vpop.f32.mrb[174].mxu1 }
 0x247   : > { %v1663_v6 = vadd.f32 %v5364_v44, %v1662_v4  ;;  %v3417_v7 = vpop.f32.mrb[175].mxu0  ;;  %v2228_v8 = vadd.f32 %v5364_v44, %v2227_v5  ;;  %v3756_v9 = vpop.f32.mrb[175].mxu1 }
 0x249   : > { %2439 = vst.msk [vmem:[%s4390_s29 + $0x2b8] sm:$0xff] %vm2351_vm5, %v1663_v6  ;;  %2552 = vst.msk [vmem:[%s4390_s29 + $0x640] sm:$0xff] %vm2351_vm5, %v2228_v8 }
 0x24a   : > { %v1667_v10 = vpop.f32.mrb[176].mxu0  ;;  %v2232_v11 = vpop.f32.mrb[176].mxu1 }
 0x24b   : > { %v1668_v12 = vadd.f32 %v5364_v44, %v1667_v10  ;;  %v3420_v13 = vpop.f32.mrb[177].mxu0  ;;  %v2233_v14 = vadd.f32 %v5364_v44, %v2232_v11  ;;  %v3759_v15 = vpop.f32.mrb[177].mxu1 }
 0x24d   : > { %2440 = vst.msk [vmem:[%s4390_s29 + $0x2c0] sm:$0xff] %vm2351_vm5, %v1668_v12  ;;  %2553 = vst.msk [vmem:[%s4390_s29 + $0x648] sm:$0xff] %vm2351_vm5, %v2233_v14 }
 0x24e   : > { %v1672_v16 = vpop.f32.mrb[178].mxu0  ;;  %v2237_v17 = vpop.f32.mrb[178].mxu1 }
 0x24f   : > { %v1673_v18 = vadd.f32 %v5364_v44, %v1672_v16  ;;  %v3423_v19 = vpop.f32.mrb[179].mxu0  ;;  %v2238_v20 = vadd.f32 %v5364_v44, %v2237_v17  ;;  %v3762_v21 = vpop.f32.mrb[179].mxu1 }
 0x251   : > { %2441 = vst.msk [vmem:[%s4390_s29 + $0x2c8] sm:$0xff] %vm2351_vm5, %v1673_v18  ;;  %2554 = vst.msk [vmem:[%s4390_s29 + $0x650] sm:$0xff] %vm2351_vm5, %v2238_v20 }
 0x252   : > { %v1677_v22 = vpop.f32.mrb[180].mxu0  ;;  %v2242_v23 = vpop.f32.mrb[180].mxu1 }
 0x253   : > { %v1678_v24 = vadd.f32 %v5364_v44, %v1677_v22  ;;  %v3426_v25 = vpop.f32.mrb[181].mxu0  ;;  %v2243_v26 = vadd.f32 %v5364_v44, %v2242_v23  ;;  %v3765_v27 = vpop.f32.mrb[181].mxu1 }
 0x255   : > { %2442 = vst.msk [vmem:[%s4390_s29 + $0x2d0] sm:$0xff] %vm2351_vm5, %v1678_v24  ;;  %2555 = vst.msk [vmem:[%s4390_s29 + $0x658] sm:$0xff] %vm2351_vm5, %v2243_v26 }
 0x256   : > { %v1682_v48 = vpop.f32.mrb[182].mxu0  ;;  %v2247_v28 = vpop.f32.mrb[182].mxu1 }
 0x257   : > { %v1683_v30 = vadd.f32 %v5364_v44, %v1682_v48  ;;  %v3429_v1 = vpop.f32.mrb[183].mxu0  ;;  %v2248_v31 = vadd.f32 %v5364_v44, %v2247_v28  ;;  %v3768_v32 = vpop.f32.mrb[183].mxu1 }
 0x259   : > { %2443 = vst.msk [vmem:[%s4390_s29 + $0x2d8] sm:$0xff] %vm2351_vm5, %v1683_v30  ;;  %2556 = vst.msk [vmem:[%s4390_s29 + $0x660] sm:$0xff] %vm2351_vm5, %v2248_v31 }
 0x25a   : > { %v1687_v33 = vpop.f32.mrb[184].mxu0  ;;  %v2252_v34 = vpop.f32.mrb[184].mxu1 }
 0x25b   : > { %v1688_v35 = vadd.f32 %v5364_v44, %v1687_v33  ;;  %v3432_v36 = vpop.f32.mrb[185].mxu0  ;;  %v2253_v37 = vadd.f32 %v5364_v44, %v2252_v34  ;;  %v3771_v38 = vpop.f32.mrb[185].mxu1 }
 0x25d   : > { %2444 = vst.msk [vmem:[%s4390_s29 + $0x2e0] sm:$0xff] %vm2351_vm5, %v1688_v35  ;;  %2557 = vst.msk [vmem:[%s4390_s29 + $0x668] sm:$0xff] %vm2351_vm5, %v2253_v37 }
 0x25e   : > { %v1692_v39 = vpop.f32.mrb[186].mxu0  ;;  %v2257_v40 = vpop.f32.mrb[186].mxu1 }
 0x25f   : > { %v1693_v41 = vadd.f32 %v5364_v44, %v1692_v39  ;;  %v3435_v42 = vpop.f32.mrb[187].mxu0  ;;  %v2258_v43 = vadd.f32 %v5364_v44, %v2257_v40  ;;  %v3774_v45 = vpop.f32.mrb[187].mxu1 }
 0x261   : > { %2445 = vst.msk [vmem:[%s4390_s29 + $0x2e8] sm:$0xff] %vm2351_vm5, %v1693_v41  ;;  %2558 = vst.msk [vmem:[%s4390_s29 + $0x670] sm:$0xff] %vm2351_vm5, %v2258_v43 }
 0x262   : > { %v1697_v46 = vpop.f32.mrb[188].mxu0  ;;  %v2262_v47 = vpop.f32.mrb[188].mxu1 }
 0x263   : > { %v1698_v49 = vadd.f32 %v5364_v44, %v1697_v46  ;;  %v3438_v29 = vpop.f32.mrb[189].mxu0  ;;  %v2263_v50 = vadd.f32 %v5364_v44, %v2262_v47  ;;  %v3777_v51 = vpop.f32.mrb[189].mxu1 }
 0x265   : > { %2446 = vst.msk [vmem:[%s4390_s29 + $0x2f0] sm:$0xff] %vm2351_vm5, %v1698_v49  ;;  %2559 = vst.msk [vmem:[%s4390_s29 + $0x678] sm:$0xff] %vm2351_vm5, %v2263_v50 }
 0x266   : > { %v1702_v52 = vpop.f32.mrb[190].mxu0  ;;  %v2267_v53 = vpop.f32.mrb[190].mxu1 }
 0x267   : > { %v1703_v54 = vadd.f32 %v5364_v44, %v1702_v52  ;;  %v3441_v55 = vpop.f32.mrb[191].mxu0  ;;  %v2268_v56 = vadd.f32 %v5364_v44, %v2267_v53  ;;  %v3780_v57 = vpop.f32.mrb[191].mxu1 }
 0x269   : > { %2447 = vst.msk [vmem:[%s4390_s29 + $0x2f8] sm:$0xff] %vm2351_vm5, %v1703_v54  ;;  %2560 = vst.msk [vmem:[%s4390_s29 + $0x680] sm:$0xff] %vm2351_vm5, %v2268_v56 }
 0x26a   : > { %v1707_v58 = vpop.f32.mrb[192].mxu0  ;;  %v2272_v59 = vpop.f32.mrb[192].mxu1 }
 0x26b   : > { %v1708_v60 = vadd.f32 %v5364_v44, %v1707_v58  ;;  %v3444_v61 = vpop.f32.mrb[193].mxu0  ;;  %v2273_v62 = vadd.f32 %v5364_v44, %v2272_v59  ;;  %v3783_v63 = vpop.f32.mrb[193].mxu1 }
 0x26d   : > { %2448 = vst.msk [vmem:[%s4390_s29 + $0x300] sm:$0xff] %vm2351_vm5, %v1708_v60  ;;  %2561 = vst.msk [vmem:[%s4390_s29 + $0x688] sm:$0xff] %vm2351_vm5, %v2273_v62 }
 0x26e   : > { %v1712_v0 = vpop.f32.mrb[194].mxu0  ;;  %v2277_v2 = vpop.f32.mrb[194].mxu1 }
 0x26f   : > { %v1713_v3 = vadd.f32 %v5364_v44, %v1712_v0  ;;  %v3447_v4 = vpop.f32.mrb[195].mxu0  ;;  %v2278_v5 = vadd.f32 %v5364_v44, %v2277_v2  ;;  %v3786_v6 = vpop.f32.mrb[195].mxu1 }
 0x271   : > { %2449 = vst.msk [vmem:[%s4390_s29 + $0x308] sm:$0xff] %vm2351_vm5, %v1713_v3  ;;  %2562 = vst.msk [vmem:[%s4390_s29 + $0x690] sm:$0xff] %vm2351_vm5, %v2278_v5 }
 0x272   : > { %v1717_v7 = vpop.f32.mrb[196].mxu0  ;;  %v2282_v8 = vpop.f32.mrb[196].mxu1 }
 0x273   : > { %v1718_v9 = vadd.f32 %v5364_v44, %v1717_v7  ;;  %v3450_v10 = vpop.f32.mrb[197].mxu0  ;;  %v2283_v11 = vadd.f32 %v5364_v44, %v2282_v8  ;;  %v3789_v12 = vpop.f32.mrb[197].mxu1 }
 0x275   : > { %2450 = vst.msk [vmem:[%s4390_s29 + $0x310] sm:$0xff] %vm2351_vm5, %v1718_v9  ;;  %2563 = vst.msk [vmem:[%s4390_s29 + $0x698] sm:$0xff] %vm2351_vm5, %v2283_v11 }
 0x276   : > { %v1722_v13 = vpop.f32.mrb[198].mxu0  ;;  %v2287_v14 = vpop.f32.mrb[198].mxu1 }
 0x277   : > { %v1723_v15 = vadd.f32 %v5364_v44, %v1722_v13  ;;  %v3453_v16 = vpop.f32.mrb[199].mxu0  ;;  %v2288_v17 = vadd.f32 %v5364_v44, %v2287_v14  ;;  %v3792_v18 = vpop.f32.mrb[199].mxu1 }
 0x279   : > { %2451 = vst.msk [vmem:[%s4390_s29 + $0x318] sm:$0xff] %vm2351_vm5, %v1723_v15  ;;  %2564 = vst.msk [vmem:[%s4390_s29 + $0x6a0] sm:$0xff] %vm2351_vm5, %v2288_v17 }
 0x27a   : > { %v1727_v19 = vpop.f32.mrb[200].mxu0  ;;  %v2292_v20 = vpop.f32.mrb[200].mxu1 }
 0x27b   : > { %v1728_v21 = vadd.f32 %v5364_v44, %v1727_v19  ;;  %v3456_v22 = vpop.f32.mrb[201].mxu0  ;;  %v2293_v23 = vadd.f32 %v5364_v44, %v2292_v20  ;;  %v3795_v24 = vpop.f32.mrb[201].mxu1 }
 0x27d   : > { %2452 = vst.msk [vmem:[%s4390_s29 + $0x320] sm:$0xff] %vm2351_vm5, %v1728_v21  ;;  %2565 = vst.msk [vmem:[%s4390_s29 + $0x6a8] sm:$0xff] %vm2351_vm5, %v2293_v23 }
 0x27e   : > { %v1732_v25 = vpop.f32.mrb[202].mxu0  ;;  %v2297_v26 = vpop.f32.mrb[202].mxu1 }
 0x27f   : > { %v1733_v27 = vadd.f32 %v5364_v44, %v1732_v25  ;;  %v3459_v48 = vpop.f32.mrb[203].mxu0  ;;  %v2298_v28 = vadd.f32 %v5364_v44, %v2297_v26  ;;  %v3798_v30 = vpop.f32.mrb[203].mxu1 }
 0x281   : > { %2453 = vst.msk [vmem:[%s4390_s29 + $0x328] sm:$0xff] %vm2351_vm5, %v1733_v27  ;;  %2566 = vst.msk [vmem:[%s4390_s29 + $0x6b0] sm:$0xff] %vm2351_vm5, %v2298_v28 }
 0x282   : > { %v1737_v1 = vpop.f32.mrb[204].mxu0  ;;  %v2302_v31 = vpop.f32.mrb[204].mxu1 }
 0x283   : > { %v1738_v32 = vadd.f32 %v5364_v44, %v1737_v1  ;;  %v3462_v33 = vpop.f32.mrb[205].mxu0  ;;  %v2303_v34 = vadd.f32 %v5364_v44, %v2302_v31  ;;  %v3801_v35 = vpop.f32.mrb[205].mxu1 }
 0x285   : > { %2454 = vst.msk [vmem:[%s4390_s29 + $0x330] sm:$0xff] %vm2351_vm5, %v1738_v32  ;;  %2567 = vst.msk [vmem:[%s4390_s29 + $0x6b8] sm:$0xff] %vm2351_vm5, %v2303_v34 }
 0x286   : > { %v1742_v36 = vpop.f32.mrb[206].mxu0  ;;  %v2307_v37 = vpop.f32.mrb[206].mxu1 }
 0x287   : > { %v1743_v38 = vadd.f32 %v5364_v44, %v1742_v36  ;;  %v3465_v39 = vpop.f32.mrb[207].mxu0  ;;  %v2308_v40 = vadd.f32 %v5364_v44, %v2307_v37  ;;  %v3804_v41 = vpop.f32.mrb[207].mxu1 }
 0x289   : > { %2455 = vst.msk [vmem:[%s4390_s29 + $0x338] sm:$0xff] %vm2351_vm5, %v1743_v38  ;;  %2568 = vst.msk [vmem:[%s4390_s29 + $0x6c0] sm:$0xff] %vm2351_vm5, %v2308_v40 }
 0x28a   : > { %v1747_v42 = vpop.f32.mrb[208].mxu0  ;;  %v2312_v43 = vpop.f32.mrb[208].mxu1 }
 0x28b   : > { %v1748_v45 = vadd.f32 %v5364_v44, %v1747_v42  ;;  %v3468_v46 = vpop.f32.mrb[209].mxu0  ;;  %v2313_v47 = vadd.f32 %v5364_v44, %v2312_v43  ;;  %v3807_v49 = vpop.f32.mrb[209].mxu1 }
 0x28d   : > { %2456 = vst.msk [vmem:[%s4390_s29 + $0x340] sm:$0xff] %vm2351_vm5, %v1748_v45  ;;  %2569 = vst.msk [vmem:[%s4390_s29 + $0x6c8] sm:$0xff] %vm2351_vm5, %v2313_v47 }
 0x28e   : > { %v1752_v29 = vpop.f32.mrb[210].mxu0  ;;  %v2317_v50 = vpop.f32.mrb[210].mxu1 }
 0x28f   : > { %v1753_v51 = vadd.f32 %v5364_v44, %v1752_v29  ;;  %v3471_v52 = vpop.f32.mrb[211].mxu0  ;;  %v2318_v53 = vadd.f32 %v5364_v44, %v2317_v50  ;;  %v3810_v54 = vpop.f32.mrb[211].mxu1 }
 0x291   : > { %2457 = vst.msk [vmem:[%s4390_s29 + $0x348] sm:$0xff] %vm2351_vm5, %v1753_v51  ;;  %2570 = vst.msk [vmem:[%s4390_s29 + $0x6d0] sm:$0xff] %vm2351_vm5, %v2318_v53 }
 0x292   : > { %v1757_v55 = vpop.f32.mrb[212].mxu0  ;;  %v2322_v56 = vpop.f32.mrb[212].mxu1 }
 0x293   : > { %v1758_v57 = vadd.f32 %v5364_v44, %v1757_v55  ;;  %v3474_v58 = vpop.f32.mrb[213].mxu0  ;;  %v2323_v59 = vadd.f32 %v5364_v44, %v2322_v56  ;;  %v3813_v60 = vpop.f32.mrb[213].mxu1 }
 0x295   : > { %2458 = vst.msk [vmem:[%s4390_s29 + $0x350] sm:$0xff] %vm2351_vm5, %v1758_v57  ;;  %2571 = vst.msk [vmem:[%s4390_s29 + $0x6d8] sm:$0xff] %vm2351_vm5, %v2323_v59 }
 0x296   : > { %v1762_v61 = vpop.f32.mrb[214].mxu0  ;;  %v2327_v62 = vpop.f32.mrb[214].mxu1 }
 0x297   : > { %v1763_v63 = vadd.f32 %v5364_v44, %v1762_v61  ;;  %v3477_v0 = vpop.f32.mrb[215].mxu0  ;;  %v2328_v2 = vadd.f32 %v5364_v44, %v2327_v62  ;;  %v3816_v3 = vpop.f32.mrb[215].mxu1 }
 0x299   : > { %2459 = vst.msk [vmem:[%s4390_s29 + $0x358] sm:$0xff] %vm2351_vm5, %v1763_v63  ;;  %2572 = vst.msk [vmem:[%s4390_s29 + $0x6e0] sm:$0xff] %vm2351_vm5, %v2328_v2 }
 0x29a   : > { %v1767_v4 = vpop.f32.mrb[216].mxu0  ;;  %v2332_v5 = vpop.f32.mrb[216].mxu1 }
 0x29b   : > { %v1768_v6 = vadd.f32 %v5364_v44, %v1767_v4  ;;  %v3480_v7 = vpop.f32.mrb[217].mxu0  ;;  %v2333_v8 = vadd.f32 %v5364_v44, %v2332_v5  ;;  %v3819_v9 = vpop.f32.mrb[217].mxu1 }
 0x29d   : > { %2460 = vst.msk [vmem:[%s4390_s29 + $0x360] sm:$0xff] %vm2351_vm5, %v1768_v6  ;;  %2573 = vst.msk [vmem:[%s4390_s29 + $0x6e8] sm:$0xff] %vm2351_vm5, %v2333_v8 }
 0x29e   : > { %v1772_v10 = vpop.f32.mrb[218].mxu0  ;;  %v2337_v11 = vpop.f32.mrb[218].mxu1 }
 0x29f   : > { %v1773_v12 = vadd.f32 %v5364_v44, %v1772_v10  ;;  %v3483_v13 = vpop.f32.mrb[219].mxu0  ;;  %v2338_v14 = vadd.f32 %v5364_v44, %v2337_v11  ;;  %v3822_v15 = vpop.f32.mrb[219].mxu1 }
 0x2a1   : > { %2461 = vst.msk [vmem:[%s4390_s29 + $0x368] sm:$0xff] %vm2351_vm5, %v1773_v12  ;;  %2574 = vst.msk [vmem:[%s4390_s29 + $0x6f0] sm:$0xff] %vm2351_vm5, %v2338_v14 }
 0x2a2   : > { %v1777_v16 = vpop.f32.mrb[220].mxu0  ;;  %v2342_v17 = vpop.f32.mrb[220].mxu1 }
 0x2a3   : > { %v1778_v18 = vadd.f32 %v5364_v44, %v1777_v16  ;;  %v3486_v19 = vpop.f32.mrb[221].mxu0  ;;  %v2343_v20 = vadd.f32 %v5364_v44, %v2342_v17  ;;  %v3825_v21 = vpop.f32.mrb[221].mxu1 }
 0x2a5   : > { %2462 = vst.msk [vmem:[%s4390_s29 + $0x370] sm:$0xff] %vm2351_vm5, %v1778_v18  ;;  %2575 = vst.msk [vmem:[%s4390_s29 + $0x6f8] sm:$0xff] %vm2351_vm5, %v2343_v20 }
 0x2a6   : > { %v1782_v22 = vpop.f32.mrb[222].mxu0  ;;  %v2347_v23 = vpop.f32.mrb[222].mxu1 }
 0x2a7   : > { %v1783_v24 = vadd.f32 %v5364_v44, %v1782_v22  ;;  %v3489_v25 = vpop.f32.mrb[223].mxu0  ;;  %v2348_v26 = vadd.f32 %v5364_v44, %v2347_v23  ;;  %v3828_v27 = vpop.f32.mrb[223].mxu1 }
 0x2a9   : > { %2463 = vst.msk [vmem:[%s4390_s29 + $0x378] sm:$0xff] %vm2351_vm5, %v1783_v24  ;;  %2576 = vst.msk [vmem:[%s4390_s29 + $0x700] sm:$0xff] %vm2351_vm5, %v2348_v26 }
 0x2aa   : > { %v1787_v48 = vpop.f32.mrb[224].mxu0 }
 0x2ab   : > { %v1788_v28 = vadd.f32 %v5364_v44, %v1787_v48  ;;  %v3492_v30 = vpop.f32.mrb[225].mxu0 }
 0x2ad   : > { %2464 = vst.msk [vmem:[%s4390_s29 + $0x380] sm:$0xff] %vm2351_vm5, %v1788_v28 }
 0x2ae PF: > { %s13_s14 = sadd.s32 1, %s3888_s14   ;;  %s5556_s12 = smov %s3884_s13 }
 0x2af   : > { %p10_p5 = scmp.ge.s32.totalorder %s13_s14, 6   ;;  %s5557_s13 = smov %s5559_s15 }
 0x2b1   :  { %12 = sbr.rel (!%p10_p5) target bundleno = 2 (0x2), region = 68 }

</bundles_post_ra>
